<compile_context>
chip_gen: v6e
topology: v6e:2x2x1
jax: 0.10.0
libtpu: 0.0.40
codegen_flags: <defaults>
</compile_context>

<pallas_src>
import functools

import jax
import jax.numpy as jnp
from jax import lax
from jax.experimental import pallas as pl
from jax.experimental.pallas import tpu as pltpu

LANE = 128
VMEM_LIMIT = 32 * 1024 * 1024


def _round_up(x, m):
    return (x + m - 1) // m * m


def _pad2d(a, rows, cols):
    return jnp.pad(a, ((0, rows - a.shape[0]), (0, cols - a.shape[1])))


# ----------------------------------------------------------------------------
# Phase 1 kernel: conv-as-matmul (bf16 x bf16 -> f32) + per-channel stats
# accumulation across the row-tile grid axis (stats output is grid-resident).
# ----------------------------------------------------------------------------
def conv_stats_kernel(p_ref, w_ref, y_ref, stats_ref, *, tm, rows_valid):
    i = pl.program_id(0)

    # MXU matmul: bf16 operands, f32 accumulation.
    y = jnp.dot(p_ref[...], w_ref[...], preferred_element_type=jnp.float32)
    y_ref[...] = y

    # Mask out padded rows so BN statistics only see real (N*Ho*Wo) rows.
    row_ids = i * tm + lax.broadcasted_iota(jnp.int32, (tm, 1), 0)
    ym = jnp.where(row_ids < rows_valid, y, 0.0)
    s = jnp.sum(ym, axis=0, keepdims=True)
    ss = jnp.sum(ym * ym, axis=0, keepdims=True)

    @pl.when(i == 0)
    def _():
        stats_ref[...] = jnp.zeros_like(stats_ref)

    stats_ref[0:1, :] = stats_ref[0:1, :] + s
    stats_ref[1:2, :] = stats_ref[1:2, :] + ss


# ----------------------------------------------------------------------------
# Phase 2 kernel: BN normalize (global stats) + gamma/beta + optional residual
# add + per-channel ReLU mask. 4-ref variant (no residual) or 5-ref variant.
# ----------------------------------------------------------------------------
def bn_finalize_kernel(y_ref, stats_ref, par_ref, *rest, count, eps, add_residual):
    if add_residual:
        res_ref, out_ref = rest
    else:
        (out_ref,) = rest

    inv_n = 1.0 / count
    mean = stats_ref[0:1, :] * inv_n
    var = jnp.maximum(stats_ref[1:2, :] * inv_n - mean * mean, 0.0)  # biased var
    gamma = par_ref[0:1, :]
    beta = par_ref[1:2, :]
    relu_mask = par_ref[2:3, :]

    scale = lax.rsqrt(var + eps) * gamma
    shift = beta - mean * scale
    y = y_ref[...] * scale + shift
    if add_residual:
        y = y + res_ref[...]
    y = jnp.where(relu_mask > 0.0, jnp.maximum(y, 0.0), y)
    out_ref[...] = y.astype(out_ref.dtype)


# ----------------------------------------------------------------------------
# One conv + BN (+ residual) (+ ReLU-masked) stage, row-tiled, two pallas_calls.
# ----------------------------------------------------------------------------
def _conv_stage(patches, w_mat, gamma, beta, relu_mask, *, residual=None, eps=1e-5):
    rows, k = patches.shape
    kp = _round_up(k, LANE)                 # contraction dim padded to 128
    ct = w_mat.shape[1]                     # output channels (already 128-padded)

    tm = min(256, _round_up(rows, 16))      # row tile (bf16 sublane friendly)
    rows_pad = _round_up(rows, tm)
    grid = (rows_pad // tm,)

    p_bf16 = _pad2d(patches, rows_pad, kp).astype(jnp.bfloat16)
    w_bf16 = _pad2d(w_mat, kp, ct).astype(jnp.bfloat16)

    # ---- phase 1: matmul + stats accumulation ------------------------------
    y_pre, stats = pl.pallas_call(
        functools.partial(conv_stats_kernel, tm=tm, rows_valid=rows),
        grid=grid,
        in_specs=[pl.BlockSpec((tm, kp), lambda i: (i, 0)),
                  pl.BlockSpec((kp, ct), lambda i: (0, 0))],
        out_specs=(pl.BlockSpec((tm, ct), lambda i: (i, 0)),
                   pl.BlockSpec((8, ct), lambda i: (0, 0))),
        out_shape=(jax.ShapeDtypeStruct((rows_pad, ct), jnp.float32),
                   jax.ShapeDtypeStruct((8, ct), jnp.float32)),
        compiler_params=pltpu.CompilerParams(
            dimension_semantics=("arbitrary",),   # stats accumulate across tiles
            vmem_limit_bytes=VMEM_LIMIT),
        cost_estimate=pl.CostEstimate(
            flops=2 * rows_pad * kp * ct,
            transcendentals=0,
            bytes_accessed=p_bf16.size * 2 + w_bf16.size * 2 + rows_pad * ct * 4),
    )(p_bf16, w_bf16)

    # gamma / beta / relu-mask packed into one (8, ct) VMEM-friendly operand.
    par = jnp.stack([gamma, beta, relu_mask] + [jnp.zeros_like(gamma)] * 5, axis=0)

    add_res = residual is not None
    inputs = [y_pre, stats, par]
    in_specs = [pl.BlockSpec((tm, ct), lambda i: (i, 0)),
                pl.BlockSpec((8, ct), lambda i: (0, 0)),
                pl.BlockSpec((8, ct), lambda i: (0, 0))]
    if add_res:
        inputs.append(_pad2d(residual, rows_pad, ct))
        in_specs.append(pl.BlockSpec((tm, ct), lambda i: (i, 0)))

    # ---- phase 2: normalize + affine + residual + relu ---------------------
    out = pl.pallas_call(
        functools.partial(bn_finalize_kernel, count=float(rows), eps=eps,
                          add_residual=add_res),
        grid=grid,
        in_specs=in_specs,
        out_specs=pl.BlockSpec((tm, ct), lambda i: (i, 0)),
        out_shape=jax.ShapeDtypeStruct((rows_pad, ct), jnp.float32),
        compiler_params=pltpu.CompilerParams(
            dimension_semantics=("parallel",),    # independent row tiles
            vmem_limit_bytes=VMEM_LIMIT),
    )(*inputs)

    return out[:rows]


# ----------------------------------------------------------------------------
# Glue: im2col (NHWC), weight reshaping, full Res_2d forward.
# ----------------------------------------------------------------------------
def _im2col(x_nhwc, kh, kw, stride, pad):
    x_p = jnp.pad(x_nhwc, ((0, 0), (pad, pad), (pad, pad), (0, 0)))
    n, hp, wp, c = x_p.shape
    ho = (hp - kh) // stride + 1
    wo = (wp - kw) // stride + 1
    taps = []
    for i in range(kh):
        for j in range(kw):
            taps.append(x_p[:, i:i + stride * ho:stride, j:j + stride * wo:stride, :])
    patches = jnp.concatenate(taps, axis=-1)               # (N, Ho, Wo, KH*KW*Cin)
    return patches.reshape(n * ho * wo, kh * kw * c), (n, ho, wo)


def _w_to_mat(w_oihw):
    # (Cout, Cin, KH, KW) -> (KH, KW, Cin, Cout) -> (KH*KW*Cin, Cout); matches tap order.
    return jnp.transpose(w_oihw, (2, 3, 1, 0)).reshape(-1, w_oihw.shape[0])


def res_2d_forward(x_nchw, p, eps=1e-5):
    """Res_2d.forward (stride=2, diff=True path) in training-mode BN semantics."""
    c_out = p['w1'].shape[0]
    cpad = _round_up(c_out, LANE)
    x_nhwc = jnp.transpose(x_nchw, (0, 2, 3, 1))

    def padv(v):
        return jnp.pad(v, (0, cpad - c_out))

    # ---- Stage A: fused conv1 + conv3 (shared im2col patches, stride 2) ----
    patches_a, (n, ho, wo) = _im2col(x_nhwc, 3, 3, 2, 1)
    w1m, w3m = _w_to_mat(p['w1']), _w_to_mat(p['w3'])
    k1 = w1m.shape[0]
    w13 = jnp.concatenate([_pad2d(w1m, k1, cpad), _pad2d(w3m, k1, cpad)], axis=1)
    gamma13 = jnp.concatenate([padv(p['g1']), padv(p['g3'])])
    beta13 = jnp.concatenate([padv(p['be1']), padv(p['be3'])])
    relu13 = jnp.concatenate([jnp.ones((cpad,), jnp.float32),      # relu(bn1(conv1))
                              jnp.zeros((cpad,), jnp.float32)])    # bn3(conv3): no relu
    y13 = _conv_stage(patches_a, w13, gamma13, beta13, relu13, eps=eps)

    rows = n * ho * wo
    h = y13[:, :c_out].reshape(n, ho, wo, c_out)     # relu(bn1(conv1(x)))
    sc = y13[:, cpad:cpad + cpad]                    # bn3(conv3(x)); padded cols are 0

    # ---- Stage B: conv2 (stride 1) + bn2 + shortcut add + relu -------------
    patches_b, _ = _im2col(h, 3, 3, 1, 1)
    w2p = _pad2d(_w_to_mat(p['w2']), 3 * 3 * c_out, cpad)
    out2 = _conv_stage(patches_b, w2p, padv(p['g2']), padv(p['be2']),
                       jnp.ones((cpad,), jnp.float32), residual=sc, eps=eps)

    out = out2[:rows, :c_out].reshape(n, ho, wo, c_out)
    return jnp.transpose(out, (0, 3, 1, 2))          # back to NCHW


# ----------------------------------------------------------------------------
# Pure-JAX f32 reference (lax.conv, HIGHEST precision) for correctness check.
# ----------------------------------------------------------------------------
def _ref_forward(x, p, eps=1e-5):
    def conv(x, w, b, stride):
        y = lax.conv_general_dilated(
            x, w, (stride, stride), ((1, 1), (1, 1)),
            dimension_numbers=('NCHW', 'OIHW', 'NCHW'),
            precision=lax.Precision.HIGHEST)
        return y + b[None, :, None, None]

    def bn(y, g, be):
        mean = y.mean(axis=(0, 2, 3), keepdims=True)
        var = jnp.square(y - mean).mean(axis=(0, 2, 3), keepdims=True)
        return ((y - mean) * lax.rsqrt(var + eps) * g[None, :, None, None]
                + be[None, :, None, None])

    h = jax.nn.relu(bn(conv(x, p['w1'], p['b1'], 2), p['g1'], p['be1']))
    out = bn(conv(h, p['w2'], p['b2'], 1), p['g2'], p['be2'])
    sc = bn(conv(x, p['w3'], p['b3'], 2), p['g3'], p['be3'])
    return jax.nn.relu(out + sc)


# ----------------------------------------------------------------------------
# Main
# ----------------------------------------------------------------------------
if __name__ == "__main__":
    N, C_IN, C_OUT, H, W, K = 2, 4, 8, 16, 16, 3

    key = jax.random.PRNGKey(0)
    ks = jax.random.split(key, 13)
    params = {
        'w1': 0.1 * jax.random.normal(ks[0], (C_OUT, C_IN, K, K), jnp.float32),
        'b1': 0.1 * jax.random.normal(ks[1], (C_OUT,), jnp.float32),
        'g1': 1.0 + 0.1 * jax.random.normal(ks[2], (C_OUT,), jnp.float32),
        'be1': 0.1 * jax.random.normal(ks[3], (C_OUT,), jnp.float32),
        'w2': 0.1 * jax.random.normal(ks[4], (C_OUT, C_OUT, K, K), jnp.float32),
        'b2': 0.1 * jax.random.normal(ks[5], (C_OUT,), jnp.float32),
        'g2': 1.0 + 0.1 * jax.random.normal(ks[6], (C_OUT,), jnp.float32),
        'be2': 0.1 * jax.random.normal(ks[7], (C_OUT,), jnp.float32),
        'w3': 0.1 * jax.random.normal(ks[8], (C_OUT, C_IN, K, K), jnp.float32),
        'b3': 0.1 * jax.random.normal(ks[9], (C_OUT,), jnp.float32),
        'g3': 1.0 + 0.1 * jax.random.normal(ks[10], (C_OUT,), jnp.float32),
        'be3': 0.1 * jax.random.normal(ks[11], (C_OUT,), jnp.float32),
    }
    x = jax.random.normal(ks[12], (N, C_IN, H, W), jnp.float32)

    fwd = jax.jit(res_2d_forward)
    out = jax.block_until_ready(fwd(x, params))
    ref = jax.block_until_ready(_ref_forward(x, params))

    assert out.shape == (N, C_OUT, H // 2, W // 2), out.shape
    # bf16 MXU operands (f32 accumulation) vs an f32 HIGHEST reference -> bf16-level tolerance.
    assert jnp.allclose(out, ref, atol=5e-2, rtol=5e-2), float(jnp.abs(out - ref).max())
    print("KERNEL_OK")
</pallas_src>

<mosaic_0001>
module attributes {stable_mosaic.version = 11 : i64} {
  func.func @conv_stats_kernel(%arg0: i32, %arg1: memref<128x128xbf16, #tpu.memory_space<vmem>>, %arg2: memref<128x256xbf16, #tpu.memory_space<vmem>>, %arg3: memref<128x256xf32, #tpu.memory_space<vmem>>, %arg4: memref<8x256xf32, #tpu.memory_space<vmem>>) attributes {dimension_semantics = [#tpu.dimension_semantics<arbitrary>], iteration_bounds = array<i64: 1>, scalar_prefetch = 0 : i64, scratch_operands = 0 : i64, tpu.core_type = #tpu.core_type<tc>, window_params = [{transform_indices = @transform_0, window_bounds = array<i64: 128, 128>}, {pipeline_mode = #tpu.pipeline_mode<synchronous>, transform_indices = @transform_1, window_bounds = array<i64: 128, 256>}, {transform_indices = @transform_2, window_bounds = array<i64: 128, 256>}, {pipeline_mode = #tpu.pipeline_mode<synchronous>, transform_indices = @transform_3, window_bounds = array<i64: 8, 256>}]} {
    %c0 = arith.constant 0 : index
    %c0_0 = arith.constant 0 : index
    %0 = vector.load %arg1[%c0, %c0_0] : memref<128x128xbf16, #tpu.memory_space<vmem>>, vector<128x128xbf16>
    %c0_1 = arith.constant 0 : index
    %c0_2 = arith.constant 0 : index
    %1 = vector.load %arg2[%c0_1, %c0_2] : memref<128x256xbf16, #tpu.memory_space<vmem>>, vector<128x256xbf16>
    %cst = arith.constant dense<0.000000e+00> : vector<128x256xf32>
    %2 = tpu.matmul %0, %1, %cst {dimension_numbers = #tpu.dot_dimension_numbers<[1], [0], [0], [1], [0, 0, 1, 1], [], []>} : vector<128x128xbf16>, vector<128x256xbf16>, vector<128x256xf32> -> vector<128x256xf32>
    %c0_3 = arith.constant 0 : index
    %c0_4 = arith.constant 0 : index
    %3 = vector.load %arg3[%c0_3, %c0_4] : memref<128x256xf32, #tpu.memory_space<vmem>>, vector<128x256xf32>
    tpu.vector_store %arg3[%c0_3, %c0_4], %2 {strides = array<i32>} : memref<128x256xf32, #tpu.memory_space<vmem>>, vector<128x256xf32>,
    %c128_i32 = arith.constant 128 : i32
    %4 = arith.muli %arg0, %c128_i32 : i32
    %5 = tpu.iota {dimensions = array<i32: 0>} : vector<128x1xi32>
    %6 = vector.broadcast %4 : i32 to vector<128x1xi32>
    %7 = arith.addi %6, %5 : vector<128x1xi32>
    %c128_i32_5 = arith.constant 128 : i32
    %8 = vector.broadcast %c128_i32_5 : i32 to vector<128x1xi32>
    %9 = arith.cmpi slt, %7, %8 : vector<128x1xi32>
    %cst_6 = arith.constant 0.000000e+00 : f32
    %10 = vector.shape_cast %9 : vector<128x1xi1> to vector<128x1xi1>
    %11 = vector.broadcast %10 : vector<128x1xi1> to vector<128x256xi1>
    %12 = vector.broadcast %cst_6 : f32 to vector<128x256xf32>
    %13 = arith.select %11, %2, %12 : vector<128x256xi1>, vector<128x256xf32>
    %cst_7 = arith.constant dense<0.000000e+00> : vector<256xf32>
    %14 = vector.multi_reduction <add>, %13, %cst_7 [0] : vector<128x256xf32> to vector<256xf32>
    %15 = vector.shape_cast %14 : vector<256xf32> to vector<1x256xf32>
    %16 = arith.mulf %13, %13 : vector<128x256xf32>
    %cst_8 = arith.constant dense<0.000000e+00> : vector<256xf32>
    %17 = vector.multi_reduction <add>, %16, %cst_8 [0] : vector<128x256xf32> to vector<256xf32>
    %18 = vector.shape_cast %17 : vector<256xf32> to vector<1x256xf32>
    %c0_i32 = arith.constant 0 : i32
    %19 = arith.cmpi eq, %arg0, %c0_i32 : i32
    %20 = arith.extui %19 : i1 to i32
    %c0_i32_9 = arith.constant 0 : i32
    %21 = arith.cmpi ne, %20, %c0_i32_9 : i32
    scf.if %21 {
      %cst_17 = arith.constant 0.000000e+00 : f32
      %28 = vector.broadcast %cst_17 : f32 to vector<8x256xf32>
      %c0_18 = arith.constant 0 : index
      %c0_19 = arith.constant 0 : index
      %29 = vector.load %arg4[%c0_18, %c0_19] : memref<8x256xf32, #tpu.memory_space<vmem>>, vector<8x256xf32>
      tpu.vector_store %arg4[%c0_18, %c0_19], %28 {strides = array<i32>} : memref<8x256xf32, #tpu.memory_space<vmem>>, vector<8x256xf32>,
    } else {
    }
    %c0_10 = arith.constant 0 : index
    %c0_11 = arith.constant 0 : index
    %22 = vector.load %arg4[%c0_10, %c0_11] : memref<8x256xf32, #tpu.memory_space<vmem>>, vector<1x256xf32>
    %23 = arith.addf %22, %15 : vector<1x256xf32>
    %c0_12 = arith.constant 0 : index
    %c0_13 = arith.constant 0 : index
    %24 = vector.load %arg4[%c0_12, %c0_13] : memref<8x256xf32, #tpu.memory_space<vmem>>, vector<1x256xf32>
    tpu.vector_store %arg4[%c0_12, %c0_13], %23 {strides = array<i32>} : memref<8x256xf32, #tpu.memory_space<vmem>>, vector<1x256xf32>,
    %c1 = arith.constant 1 : index
    %c0_14 = arith.constant 0 : index
    %25 = vector.load %arg4[%c1, %c0_14] : memref<8x256xf32, #tpu.memory_space<vmem>>, vector<1x256xf32>
    %26 = arith.addf %25, %18 : vector<1x256xf32>
    %c1_15 = arith.constant 1 : index
    %c0_16 = arith.constant 0 : index
    %27 = vector.load %arg4[%c1_15, %c0_16] : memref<8x256xf32, #tpu.memory_space<vmem>>, vector<1x256xf32>
    tpu.vector_store %arg4[%c1_15, %c0_16], %26 {strides = array<i32>} : memref<8x256xf32, #tpu.memory_space<vmem>>, vector<1x256xf32>,
    return
  }
  func.func @transform_0(%arg0: i32) -> (i32, i32) {
    %c0_i32 = arith.constant 0 : i32
    %c0_i32_0 = arith.constant 0 : i32
    return %arg0, %c0_i32 : i32, i32
  }
  func.func @transform_1(%arg0: i32) -> (i32, i32) {
    %c0_i32 = arith.constant 0 : i32
    %c0_i32_0 = arith.constant 0 : i32
    %c0_i32_1 = arith.constant 0 : i32
    return %c0_i32, %c0_i32_0 : i32, i32
  }
  func.func @transform_2(%arg0: i32) -> (i32, i32) {
    %c0_i32 = arith.constant 0 : i32
    %c0_i32_0 = arith.constant 0 : i32
    return %arg0, %c0_i32 : i32, i32
  }
  func.func @transform_3(%arg0: i32) -> (i32, i32) {
    %c0_i32 = arith.constant 0 : i32
    %c0_i32_0 = arith.constant 0 : i32
    %c0_i32_1 = arith.constant 0 : i32
    return %c0_i32, %c0_i32_0 : i32, i32
  }
}

module attributes {stable_mosaic.version = 11 : i64} {
  func.func @bn_finalize_kernel(%arg0: i32, %arg1: memref<128x256xf32, #tpu.memory_space<vmem>>, %arg2: memref<8x256xf32, #tpu.memory_space<vmem>>, %arg3: memref<8x256xf32, #tpu.memory_space<vmem>>, %arg4: memref<128x256xf32, #tpu.memory_space<vmem>>) attributes {dimension_semantics = [#tpu.dimension_semantics<parallel>], iteration_bounds = array<i64: 1>, scalar_prefetch = 0 : i64, scratch_operands = 0 : i64, tpu.core_type = #tpu.core_type<tc>, window_params = [{transform_indices = @transform_0, window_bounds = array<i64: 128, 256>}, {pipeline_mode = #tpu.pipeline_mode<synchronous>, transform_indices = @transform_1, window_bounds = array<i64: 8, 256>}, {pipeline_mode = #tpu.pipeline_mode<synchronous>, transform_indices = @transform_2, window_bounds = array<i64: 8, 256>}, {transform_indices = @transform_3, window_bounds = array<i64: 128, 256>}]} {
    %c0 = arith.constant 0 : index
    %c0_0 = arith.constant 0 : index
    %0 = vector.load %arg2[%c0, %c0_0] : memref<8x256xf32, #tpu.memory_space<vmem>>, vector<1x256xf32>
    %cst = arith.constant 7.812500e-03 : f32
    %1 = vector.broadcast %cst : f32 to vector<1x256xf32>
    %2 = arith.mulf %0, %1 : vector<1x256xf32>
    %c1 = arith.constant 1 : index
    %c0_1 = arith.constant 0 : index
    %3 = vector.load %arg2[%c1, %c0_1] : memref<8x256xf32, #tpu.memory_space<vmem>>, vector<1x256xf32>
    %cst_2 = arith.constant 7.812500e-03 : f32
    %4 = vector.broadcast %cst_2 : f32 to vector<1x256xf32>
    %5 = arith.mulf %3, %4 : vector<1x256xf32>
    %6 = arith.mulf %2, %2 : vector<1x256xf32>
    %7 = arith.subf %5, %6 : vector<1x256xf32>
    %cst_3 = arith.constant 0.000000e+00 : f32
    %8 = vector.broadcast %cst_3 : f32 to vector<1x256xf32>
    %9 = arith.maximumf %7, %8 : vector<1x256xf32>
    %c0_4 = arith.constant 0 : index
    %c0_5 = arith.constant 0 : index
    %10 = vector.load %arg3[%c0_4, %c0_5] : memref<8x256xf32, #tpu.memory_space<vmem>>, vector<1x256xf32>
    %c1_6 = arith.constant 1 : index
    %c0_7 = arith.constant 0 : index
    %11 = vector.load %arg3[%c1_6, %c0_7] : memref<8x256xf32, #tpu.memory_space<vmem>>, vector<1x256xf32>
    %c2 = arith.constant 2 : index
    %c0_8 = arith.constant 0 : index
    %12 = vector.load %arg3[%c2, %c0_8] : memref<8x256xf32, #tpu.memory_space<vmem>>, vector<1x256xf32>
    %cst_9 = arith.constant 9.99999974E-6 : f32
    %13 = vector.broadcast %cst_9 : f32 to vector<1x256xf32>
    %14 = arith.addf %9, %13 : vector<1x256xf32>
    %15 = math.rsqrt %14 : vector<1x256xf32>
    %16 = arith.mulf %15, %10 : vector<1x256xf32>
    %17 = arith.mulf %2, %16 : vector<1x256xf32>
    %18 = arith.subf %11, %17 : vector<1x256xf32>
    %c0_10 = arith.constant 0 : index
    %c0_11 = arith.constant 0 : index
    %19 = vector.load %arg1[%c0_10, %c0_11] : memref<128x256xf32, #tpu.memory_space<vmem>>, vector<128x256xf32>
    %20 = vector.broadcast %16 : vector<1x256xf32> to vector<128x256xf32>
    %21 = arith.mulf %19, %20 : vector<128x256xf32>
    %22 = vector.broadcast %18 : vector<1x256xf32> to vector<128x256xf32>
    %23 = arith.addf %21, %22 : vector<128x256xf32>
    %cst_12 = arith.constant 0.000000e+00 : f32
    %24 = vector.broadcast %cst_12 : f32 to vector<1x256xf32>
    %25 = arith.cmpf ogt, %12, %24 : vector<1x256xf32>
    %cst_13 = arith.constant 0.000000e+00 : f32
    %26 = vector.broadcast %cst_13 : f32 to vector<128x256xf32>
    %27 = arith.maximumf %23, %26 : vector<128x256xf32>
    %28 = vector.shape_cast %25 : vector<1x256xi1> to vector<1x256xi1>
    %29 = vector.broadcast %28 : vector<1x256xi1> to vector<128x256xi1>
    %30 = arith.select %29, %27, %23 : vector<128x256xi1>, vector<128x256xf32>
    %c0_14 = arith.constant 0 : index
    %c0_15 = arith.constant 0 : index
    %31 = vector.load %arg4[%c0_14, %c0_15] : memref<128x256xf32, #tpu.memory_space<vmem>>, vector<128x256xf32>
    tpu.vector_store %arg4[%c0_14, %c0_15], %30 {strides = array<i32>} : memref<128x256xf32, #tpu.memory_space<vmem>>, vector<128x256xf32>,
    return
  }
  func.func @transform_0(%arg0: i32) -> (i32, i32) {
    %c0_i32 = arith.constant 0 : i32
    %c0_i32_0 = arith.constant 0 : i32
    return %arg0, %c0_i32 : i32, i32
  }
  func.func @transform_1(%arg0: i32) -> (i32, i32) {
    %c0_i32 = arith.constant 0 : i32
    %c0_i32_0 = arith.constant 0 : i32
    %c0_i32_1 = arith.constant 0 : i32
    return %c0_i32, %c0_i32_0 : i32, i32
  }
  func.func @transform_2(%arg0: i32) -> (i32, i32) {
    %c0_i32 = arith.constant 0 : i32
    %c0_i32_0 = arith.constant 0 : i32
    %c0_i32_1 = arith.constant 0 : i32
    return %c0_i32, %c0_i32_0 : i32, i32
  }
  func.func @transform_3(%arg0: i32) -> (i32, i32) {
    %c0_i32 = arith.constant 0 : i32
    %c0_i32_0 = arith.constant 0 : i32
    return %arg0, %c0_i32 : i32, i32
  }
}

module attributes {stable_mosaic.version = 11 : i64} {
  func.func @conv_stats_kernel(%arg0: i32, %arg1: memref<128x128xbf16, #tpu.memory_space<vmem>>, %arg2: memref<128x128xbf16, #tpu.memory_space<vmem>>, %arg3: memref<128x128xf32, #tpu.memory_space<vmem>>, %arg4: memref<8x128xf32, #tpu.memory_space<vmem>>) attributes {dimension_semantics = [#tpu.dimension_semantics<arbitrary>], iteration_bounds = array<i64: 1>, scalar_prefetch = 0 : i64, scratch_operands = 0 : i64, tpu.core_type = #tpu.core_type<tc>, window_params = [{transform_indices = @transform_0, window_bounds = array<i64: 128, 128>}, {pipeline_mode = #tpu.pipeline_mode<synchronous>, transform_indices = @transform_1, window_bounds = array<i64: 128, 128>}, {transform_indices = @transform_2, window_bounds = array<i64: 128, 128>}, {pipeline_mode = #tpu.pipeline_mode<synchronous>, transform_indices = @transform_3, window_bounds = array<i64: 8, 128>}]} {
    %c0 = arith.constant 0 : index
    %c0_0 = arith.constant 0 : index
    %0 = vector.load %arg1[%c0, %c0_0] : memref<128x128xbf16, #tpu.memory_space<vmem>>, vector<128x128xbf16>
    %c0_1 = arith.constant 0 : index
    %c0_2 = arith.constant 0 : index
    %1 = vector.load %arg2[%c0_1, %c0_2] : memref<128x128xbf16, #tpu.memory_space<vmem>>, vector<128x128xbf16>
    %cst = arith.constant dense<0.000000e+00> : vector<128x128xf32>
    %2 = tpu.matmul %0, %1, %cst {dimension_numbers = #tpu.dot_dimension_numbers<[1], [0], [0], [1], [0, 0, 1, 1], [], []>} : vector<128x128xbf16>, vector<128x128xbf16>, vector<128x128xf32> -> vector<128x128xf32>
    %c0_3 = arith.constant 0 : index
    %c0_4 = arith.constant 0 : index
    %3 = vector.load %arg3[%c0_3, %c0_4] : memref<128x128xf32, #tpu.memory_space<vmem>>, vector<128x128xf32>
    tpu.vector_store %arg3[%c0_3, %c0_4], %2 {strides = array<i32>} : memref<128x128xf32, #tpu.memory_space<vmem>>, vector<128x128xf32>,
    %c128_i32 = arith.constant 128 : i32
    %4 = arith.muli %arg0, %c128_i32 : i32
    %5 = tpu.iota {dimensions = array<i32: 0>} : vector<128x1xi32>
    %6 = vector.broadcast %4 : i32 to vector<128x1xi32>
    %7 = arith.addi %6, %5 : vector<128x1xi32>
    %c128_i32_5 = arith.constant 128 : i32
    %8 = vector.broadcast %c128_i32_5 : i32 to vector<128x1xi32>
    %9 = arith.cmpi slt, %7, %8 : vector<128x1xi32>
    %cst_6 = arith.constant 0.000000e+00 : f32
    %10 = vector.shape_cast %9 : vector<128x1xi1> to vector<128x1xi1>
    %11 = vector.broadcast %10 : vector<128x1xi1> to vector<128x128xi1>
    %12 = vector.broadcast %cst_6 : f32 to vector<128x128xf32>
    %13 = arith.select %11, %2, %12 : vector<128x128xi1>, vector<128x128xf32>
    %cst_7 = arith.constant dense<0.000000e+00> : vector<128xf32>
    %14 = vector.multi_reduction <add>, %13, %cst_7 [0] : vector<128x128xf32> to vector<128xf32>
    %15 = vector.shape_cast %14 : vector<128xf32> to vector<1x128xf32>
    %16 = arith.mulf %13, %13 : vector<128x128xf32>
    %cst_8 = arith.constant dense<0.000000e+00> : vector<128xf32>
    %17 = vector.multi_reduction <add>, %16, %cst_8 [0] : vector<128x128xf32> to vector<128xf32>
    %18 = vector.shape_cast %17 : vector<128xf32> to vector<1x128xf32>
    %c0_i32 = arith.constant 0 : i32
    %19 = arith.cmpi eq, %arg0, %c0_i32 : i32
    %20 = arith.extui %19 : i1 to i32
    %c0_i32_9 = arith.constant 0 : i32
    %21 = arith.cmpi ne, %20, %c0_i32_9 : i32
    scf.if %21 {
      %cst_17 = arith.constant 0.000000e+00 : f32
      %28 = vector.broadcast %cst_17 : f32 to vector<8x128xf32>
      %c0_18 = arith.constant 0 : index
      %c0_19 = arith.constant 0 : index
      %29 = vector.load %arg4[%c0_18, %c0_19] : memref<8x128xf32, #tpu.memory_space<vmem>>, vector<8x128xf32>
      tpu.vector_store %arg4[%c0_18, %c0_19], %28 {strides = array<i32>} : memref<8x128xf32, #tpu.memory_space<vmem>>, vector<8x128xf32>,
    } else {
    }
    %c0_10 = arith.constant 0 : index
    %c0_11 = arith.constant 0 : index
    %22 = vector.load %arg4[%c0_10, %c0_11] : memref<8x128xf32, #tpu.memory_space<vmem>>, vector<1x128xf32>
    %23 = arith.addf %22, %15 : vector<1x128xf32>
    %c0_12 = arith.constant 0 : index
    %c0_13 = arith.constant 0 : index
    %24 = vector.load %arg4[%c0_12, %c0_13] : memref<8x128xf32, #tpu.memory_space<vmem>>, vector<1x128xf32>
    tpu.vector_store %arg4[%c0_12, %c0_13], %23 {strides = array<i32>} : memref<8x128xf32, #tpu.memory_space<vmem>>, vector<1x128xf32>,
    %c1 = arith.constant 1 : index
    %c0_14 = arith.constant 0 : index
    %25 = vector.load %arg4[%c1, %c0_14] : memref<8x128xf32, #tpu.memory_space<vmem>>, vector<1x128xf32>
    %26 = arith.addf %25, %18 : vector<1x128xf32>
    %c1_15 = arith.constant 1 : index
    %c0_16 = arith.constant 0 : index
    %27 = vector.load %arg4[%c1_15, %c0_16] : memref<8x128xf32, #tpu.memory_space<vmem>>, vector<1x128xf32>
    tpu.vector_store %arg4[%c1_15, %c0_16], %26 {strides = array<i32>} : memref<8x128xf32, #tpu.memory_space<vmem>>, vector<1x128xf32>,
    return
  }
  func.func @transform_0(%arg0: i32) -> (i32, i32) {
    %c0_i32 = arith.constant 0 : i32
    %c0_i32_0 = arith.constant 0 : i32
    return %arg0, %c0_i32 : i32, i32
  }
  func.func @transform_1(%arg0: i32) -> (i32, i32) {
    %c0_i32 = arith.constant 0 : i32
    %c0_i32_0 = arith.constant 0 : i32
    %c0_i32_1 = arith.constant 0 : i32
    return %c0_i32, %c0_i32_0 : i32, i32
  }
  func.func @transform_2(%arg0: i32) -> (i32, i32) {
    %c0_i32 = arith.constant 0 : i32
    %c0_i32_0 = arith.constant 0 : i32
    return %arg0, %c0_i32 : i32, i32
  }
  func.func @transform_3(%arg0: i32) -> (i32, i32) {
    %c0_i32 = arith.constant 0 : i32
    %c0_i32_0 = arith.constant 0 : i32
    %c0_i32_1 = arith.constant 0 : i32
    return %c0_i32, %c0_i32_0 : i32, i32
  }
}

module attributes {stable_mosaic.version = 11 : i64} {
  func.func @bn_finalize_kernel(%arg0: i32, %arg1: memref<128x128xf32, #tpu.memory_space<vmem>>, %arg2: memref<8x128xf32, #tpu.memory_space<vmem>>, %arg3: memref<8x128xf32, #tpu.memory_space<vmem>>, %arg4: memref<128x128xf32, #tpu.memory_space<vmem>>, %arg5: memref<128x128xf32, #tpu.memory_space<vmem>>) attributes {dimension_semantics = [#tpu.dimension_semantics<parallel>], iteration_bounds = array<i64: 1>, scalar_prefetch = 0 : i64, scratch_operands = 0 : i64, tpu.core_type = #tpu.core_type<tc>, window_params = [{transform_indices = @transform_0, window_bounds = array<i64: 128, 128>}, {pipeline_mode = #tpu.pipeline_mode<synchronous>, transform_indices = @transform_1, window_bounds = array<i64: 8, 128>}, {pipeline_mode = #tpu.pipeline_mode<synchronous>, transform_indices = @transform_2, window_bounds = array<i64: 8, 128>}, {transform_indices = @transform_3, window_bounds = array<i64: 128, 128>}, {transform_indices = @transform_4, window_bounds = array<i64: 128, 128>}]} {
    %c0 = arith.constant 0 : index
    %c0_0 = arith.constant 0 : index
    %0 = vector.load %arg2[%c0, %c0_0] : memref<8x128xf32, #tpu.memory_space<vmem>>, vector<1x128xf32>
    %cst = arith.constant 7.812500e-03 : f32
    %1 = vector.broadcast %cst : f32 to vector<1x128xf32>
    %2 = arith.mulf %0, %1 : vector<1x128xf32>
    %c1 = arith.constant 1 : index
    %c0_1 = arith.constant 0 : index
    %3 = vector.load %arg2[%c1, %c0_1] : memref<8x128xf32, #tpu.memory_space<vmem>>, vector<1x128xf32>
    %cst_2 = arith.constant 7.812500e-03 : f32
    %4 = vector.broadcast %cst_2 : f32 to vector<1x128xf32>
    %5 = arith.mulf %3, %4 : vector<1x128xf32>
    %6 = arith.mulf %2, %2 : vector<1x128xf32>
    %7 = arith.subf %5, %6 : vector<1x128xf32>
    %cst_3 = arith.constant 0.000000e+00 : f32
    %8 = vector.broadcast %cst_3 : f32 to vector<1x128xf32>
    %9 = arith.maximumf %7, %8 : vector<1x128xf32>
    %c0_4 = arith.constant 0 : index
    %c0_5 = arith.constant 0 : index
    %10 = vector.load %arg3[%c0_4, %c0_5] : memref<8x128xf32, #tpu.memory_space<vmem>>, vector<1x128xf32>
    %c1_6 = arith.constant 1 : index
    %c0_7 = arith.constant 0 : index
    %11 = vector.load %arg3[%c1_6, %c0_7] : memref<8x128xf32, #tpu.memory_space<vmem>>, vector<1x128xf32>
    %c2 = arith.constant 2 : index
    %c0_8 = arith.constant 0 : index
    %12 = vector.load %arg3[%c2, %c0_8] : memref<8x128xf32, #tpu.memory_space<vmem>>, vector<1x128xf32>
    %cst_9 = arith.constant 9.99999974E-6 : f32
    %13 = vector.broadcast %cst_9 : f32 to vector<1x128xf32>
    %14 = arith.addf %9, %13 : vector<1x128xf32>
    %15 = math.rsqrt %14 : vector<1x128xf32>
    %16 = arith.mulf %15, %10 : vector<1x128xf32>
    %17 = arith.mulf %2, %16 : vector<1x128xf32>
    %18 = arith.subf %11, %17 : vector<1x128xf32>
    %c0_10 = arith.constant 0 : index
    %c0_11 = arith.constant 0 : index
    %19 = vector.load %arg1[%c0_10, %c0_11] : memref<128x128xf32, #tpu.memory_space<vmem>>, vector<128x128xf32>
    %20 = vector.broadcast %16 : vector<1x128xf32> to vector<128x128xf32>
    %21 = arith.mulf %19, %20 : vector<128x128xf32>
    %22 = vector.broadcast %18 : vector<1x128xf32> to vector<128x128xf32>
    %23 = arith.addf %21, %22 : vector<128x128xf32>
    %c0_12 = arith.constant 0 : index
    %c0_13 = arith.constant 0 : index
    %24 = vector.load %arg4[%c0_12, %c0_13] : memref<128x128xf32, #tpu.memory_space<vmem>>, vector<128x128xf32>
    %25 = arith.addf %23, %24 : vector<128x128xf32>
    %cst_14 = arith.constant 0.000000e+00 : f32
    %26 = vector.broadcast %cst_14 : f32 to vector<1x128xf32>
    %27 = arith.cmpf ogt, %12, %26 : vector<1x128xf32>
    %cst_15 = arith.constant 0.000000e+00 : f32
    %28 = vector.broadcast %cst_15 : f32 to vector<128x128xf32>
    %29 = arith.maximumf %25, %28 : vector<128x128xf32>
    %30 = vector.shape_cast %27 : vector<1x128xi1> to vector<1x128xi1>
    %31 = vector.broadcast %30 : vector<1x128xi1> to vector<128x128xi1>
    %32 = arith.select %31, %29, %25 : vector<128x128xi1>, vector<128x128xf32>
    %c0_16 = arith.constant 0 : index
    %c0_17 = arith.constant 0 : index
    %33 = vector.load %arg5[%c0_16, %c0_17] : memref<128x128xf32, #tpu.memory_space<vmem>>, vector<128x128xf32>
    tpu.vector_store %arg5[%c0_16, %c0_17], %32 {strides = array<i32>} : memref<128x128xf32, #tpu.memory_space<vmem>>, vector<128x128xf32>,
    return
  }
  func.func @transform_0(%arg0: i32) -> (i32, i32) {
    %c0_i32 = arith.constant 0 : i32
    %c0_i32_0 = arith.constant 0 : i32
    return %arg0, %c0_i32 : i32, i32
  }
  func.func @transform_1(%arg0: i32) -> (i32, i32) {
    %c0_i32 = arith.constant 0 : i32
    %c0_i32_0 = arith.constant 0 : i32
    %c0_i32_1 = arith.constant 0 : i32
    return %c0_i32, %c0_i32_0 : i32, i32
  }
  func.func @transform_2(%arg0: i32) -> (i32, i32) {
    %c0_i32 = arith.constant 0 : i32
    %c0_i32_0 = arith.constant 0 : i32
    %c0_i32_1 = arith.constant 0 : i32
    return %c0_i32, %c0_i32_0 : i32, i32
  }
  func.func @transform_3(%arg0: i32) -> (i32, i32) {
    %c0_i32 = arith.constant 0 : i32
    %c0_i32_0 = arith.constant 0 : i32
    return %arg0, %c0_i32 : i32, i32
  }
  func.func @transform_4(%arg0: i32) -> (i32, i32) {
    %c0_i32 = arith.constant 0 : i32
    %c0_i32_0 = arith.constant 0 : i32
    return %arg0, %c0_i32 : i32, i32
  }
}

</mosaic_0001>

<bundles_post_ra>
// kernel: res_2d_forward.5
= control target key start
LH: loop header
LB: loop body
LE: loop exit
PB: predicated region body
PF: predicated region fallthrough
CT: control target
= control target key end

     0   :  { %v65_v8 = vlaneseq  ;;  %v268_v11 = vmov 0   ;;  %s640_s1 = inlined_call_operand.vmem [shape: f32[8,256], index: 1, kind: input, shape index: {}]   ;;  %s641_s2 = inlined_call_operand.vmem [shape: f32[8,256], index: 2, kind: input, shape index: {}]   ;;  %s642_s0 = inlined_call_operand.vmem [shape: f32[128,256], index: 0, kind: input, shape index: {}]   ;;  %s643_s3 = inlined_call_operand.vmem [shape: f32[128,256], index: 3, kind: output, shape index: {}]  }
   0x1   :  { %v14_v0 = vld [vmem:[%s640_s1] ss:$8 sm:$0x3]  ;;  %v262_v1 = vld [vmem:[%s640_s1 + $0x1] ss:$8 sm:$0x3] }
   0x2   :  { %v15_v2 = vmul.f32 0.0078125, %v14_v0  ;;  %v18_v3 = vmul.f32 0.0078125, %v262_v1  ;;  %v264_v9 = vld [vmem:[%s641_s2 + $0x2] ss:$8 sm:$0x3]  ;;  %v66_v10 = vshrl.u32 %v65_v8, 7 }
   0x3   :  { %vm150_vm0 = vcmp.gt.f32.partialorder %v264_v9, 0.0  ;;  %v22_v13 = vld [vmem:[%s641_s2] ss:$8 sm:$0x3]  ;;  %v34_v23 = vld [vmem:[%s642_s0 + $0x10] sm:$0xff]  ;;  %v35_v24 = vld [vmem:[%s642_s0 + $0x18] sm:$0xff] }
   0x4   :  { %v19_v4 = vmul.f32 %v15_v2, %v15_v2  ;;  %v183_v12 = vsel %vm150_vm0, 1, %v268_v11  ;;  %v67_v14 = vsub.s32 0, %v66_v10  ;;  %v71_v15 = vsub.s32 1, %v66_v10  ;;  %v263_v19 = vld [vmem:[%s641_s2 + $0x1] ss:$8 sm:$0x3] }
   0x5   :  { %v32_v21 = vld [vmem:[%s642_s0] sm:$0xff]  ;;  %v33_v22 = vld [vmem:[%s642_s0 + $0x8] sm:$0xff]  ;;  %v38_v30 = vld [vmem:[%s642_s0 + $0x30] sm:$0xff] }
   0x6   :  { %v20_v5 = vsub.f32 %v18_v3, %v19_v4  ;;  %v187_v17 = vrot.slane %v183_v12, %v67_v14  ;;  %v191_v18 = vrot.slane %v183_v12, %v71_v15  ;;  %v36_v28 = vld [vmem:[%s642_s0 + $0x20] sm:$0xff]  ;;  %v37_v29 = vld [vmem:[%s642_s0 + $0x28] sm:$0xff]  ;;  %v39_v33 = vld [vmem:[%s642_s0 + $0x38] sm:$0xff] }
   0x7   :  { %v40_v34 = vld [vmem:[%s642_s0 + $0x40] sm:$0xff]  ;;  %v41_v35 = vld [vmem:[%s642_s0 + $0x48] sm:$0xff]  ;;  %v42_v40 = vld [vmem:[%s642_s0 + $0x50] sm:$0xff] }
   0x8   :  { %v21_v6 = vmax.f32 %v20_v5, 0.0  ;;  %vm329_vm1 = vcmp.eq.s32.totalorder %v187_v17, 1  ;;  %vm333_vm2 = vcmp.eq.s32.totalorder %v191_v18, 1  ;;  %v43_v41 = vld [vmem:[%s642_s0 + $0x58] sm:$0xff]  ;;  %v44_v42 = vld [vmem:[%s642_s0 + $0x60] sm:$0xff]  ;;  %v45_v11 = vld [vmem:[%s642_s0 + $0x68] sm:$0xff] }
   0x9   :  { %v46_v12 = vld [vmem:[%s642_s0 + $0x70] sm:$0xff] }
   0xa   :  { %v27_v7 = vadd.f32 1e-05, %v21_v6 }
   0xc   :  { %266 = vrsqrt.f32 %v27_v7 }
  0x19   :  { %v267_v16 = vpop.eup %266 }
  0x1a   :  { %v29_v20 = vmul.f32 %v267_v16, %v22_v13  ;;  %v47_v13 = vld [vmem:[%s642_s0 + $0x78] sm:$0xff] }
  0x1c   :  { %v30_v25 = vmul.f32 %v29_v20, %v15_v2  ;;  %v316_v26 = vrot.slane %v29_v20, %v67_v14  ;;  %v318_v27 = vrot.slane %v29_v20, %v71_v15 }
  0x1e   :  { %v31_v36 = vsub.f32 %v263_v19, %v30_v25  ;;  %v75_v37 = vmul.f32 %v316_v26, %v32_v21  ;;  %v76_v38 = vmul.f32 %v318_v27, %v33_v22  ;;  %v77_v39 = vmul.f32 %v316_v26, %v34_v23 }
  0x1f   :  { %v78_v43 = vmul.f32 %v318_v27, %v35_v24  ;;  %v79_v44 = vmul.f32 %v316_v26, %v36_v28  ;;  %v80_v45 = vmul.f32 %v318_v27, %v37_v29  ;;  %v81_v46 = vmul.f32 %v316_v26, %v38_v30 }
  0x20   :  { %v362_v47 = vrot.slane %v31_v36, %v67_v14  ;;  %v364_v48 = vrot.slane %v31_v36, %v71_v15  ;;  %v82_v49 = vmul.f32 %v318_v27, %v39_v33  ;;  %v83_v50 = vmul.f32 %v316_v26, %v40_v34  ;;  %v48_v34 = vld [vmem:[%s642_s0 + $0x80] sm:$0xff] }
  0x21   :  { %v84_v51 = vmul.f32 %v318_v27, %v41_v35  ;;  %v85_v52 = vmul.f32 %v316_v26, %v42_v40  ;;  %v86_v53 = vmul.f32 %v318_v27, %v43_v41  ;;  %v87_v54 = vmul.f32 %v316_v26, %v44_v42  ;;  %v50_v40 = vld [vmem:[%s642_s0 + $0x90] sm:$0xff]  ;;  %v51_v41 = vld [vmem:[%s642_s0 + $0x98] sm:$0xff] }
  0x22   :  { %v118_v55 = vadd.f32 %v362_v47, %v75_v37  ;;  %v119_v56 = vadd.f32 %v364_v48, %v76_v38  ;;  %v120_v57 = vadd.f32 %v362_v47, %v77_v39  ;;  %v121_v58 = vadd.f32 %v364_v48, %v78_v43  ;;  %v49_v39 = vld [vmem:[%s642_s0 + $0x88] sm:$0xff] }
  0x23   :  { %v122_v59 = vadd.f32 %v362_v47, %v79_v44  ;;  %v123_v60 = vadd.f32 %v364_v48, %v80_v45  ;;  %v124_v61 = vadd.f32 %v362_v47, %v81_v46  ;;  %v125_v62 = vadd.f32 %v364_v48, %v82_v49  ;;  %v52_v46 = vld [vmem:[%s642_s0 + $0xa0] sm:$0xff] }
  0x24   :  { %v151_v63 = vmax.f32 %v118_v55, 0.0  ;;  %v152_v0 = vmax.f32 %v119_v56, 0.0  ;;  %v153_v1 = vmax.f32 %v120_v57, 0.0  ;;  %v154_v2 = vmax.f32 %v121_v58, 0.0 }
  0x25   :  { %v155_v3 = vmax.f32 %v122_v59, 0.0  ;;  %v156_v4 = vmax.f32 %v123_v60, 0.0  ;;  %v157_v5 = vmax.f32 %v124_v61, 0.0  ;;  %v158_v6 = vmax.f32 %v125_v62, 0.0 }
  0x26   :  { %v194_v7 = vsel %vm329_vm1, %v151_v63, %v118_v55  ;;  %v195_v8 = vsel %vm333_vm2, %v152_v0, %v119_v56  ;;  %v196_v9 = vsel %vm329_vm1, %v153_v1, %v120_v57  ;;  %v197_v10 = vsel %vm333_vm2, %v154_v2, %v121_v58  ;;  %v53_v57 = vld [vmem:[%s642_s0 + $0xa8] sm:$0xff]  ;;  %v54_v58 = vld [vmem:[%s642_s0 + $0xb0] sm:$0xff] }
  0x27   :  { %226 = vst [vmem:[%s643_s3] sm:$0xff] %v194_v7  ;;  %227 = vst [vmem:[%s643_s3 + $0x8] sm:$0xff] %v195_v8  ;;  %v198_v14 = vsel %vm329_vm1, %v155_v3, %v122_v59  ;;  %v199_v15 = vsel %vm333_vm2, %v156_v4, %v123_v60  ;;  %v200_v16 = vsel %vm329_vm1, %v157_v5, %v124_v61  ;;  %v55_v59 = vld [vmem:[%s642_s0 + $0xb8] sm:$0xff] }
  0x28   :  { %228 = vst [vmem:[%s643_s3 + $0x10] sm:$0xff] %v196_v9  ;;  %229 = vst [vmem:[%s643_s3 + $0x18] sm:$0xff] %v197_v10  ;;  %v201_v17 = vsel %vm333_vm2, %v158_v6, %v125_v62  ;;  %v126_v18 = vadd.f32 %v362_v47, %v83_v50  ;;  %v127_v19 = vadd.f32 %v364_v48, %v84_v51 }
  0x29   :  { %230 = vst [vmem:[%s643_s3 + $0x20] sm:$0xff] %v198_v14  ;;  %231 = vst [vmem:[%s643_s3 + $0x28] sm:$0xff] %v199_v15  ;;  %v128_v20 = vadd.f32 %v362_v47, %v85_v52  ;;  %v129_v21 = vadd.f32 %v364_v48, %v86_v53  ;;  %v130_v22 = vadd.f32 %v362_v47, %v87_v54 }
  0x2a   :  { %232 = vst [vmem:[%s643_s3 + $0x30] sm:$0xff] %v200_v16  ;;  %233 = vst [vmem:[%s643_s3 + $0x38] sm:$0xff] %v201_v17  ;;  %v88_v23 = vmul.f32 %v318_v27, %v45_v11  ;;  %v89_v24 = vmul.f32 %v316_v26, %v46_v12  ;;  %v90_v25 = vmul.f32 %v318_v27, %v47_v13  ;;  %v159_v28 = vmax.f32 %v126_v18, 0.0  ;;  %v56_v12 = vld [vmem:[%s642_s0 + $0xc0] sm:$0xff]  ;;  %v57_v17 = vld [vmem:[%s642_s0 + $0xc8] sm:$0xff] }
  0x2b   :  { %v160_v29 = vmax.f32 %v127_v19, 0.0  ;;  %v161_v30 = vmax.f32 %v128_v20, 0.0  ;;  %v162_v33 = vmax.f32 %v129_v21, 0.0  ;;  %v163_v35 = vmax.f32 %v130_v22, 0.0 }
  0x2c   :  { %v131_v36 = vadd.f32 %v364_v48, %v88_v23  ;;  %v132_v37 = vadd.f32 %v362_v47, %v89_v24  ;;  %v133_v38 = vadd.f32 %v364_v48, %v90_v25  ;;  %v202_v42 = vsel %vm329_vm1, %v159_v28, %v126_v18  ;;  %v58_v18 = vld [vmem:[%s642_s0 + $0xd0] sm:$0xff]  ;;  %v60_v24 = vld [vmem:[%s642_s0 + $0xe0] sm:$0xff] }
  0x2d   :  { %v203_v43 = vsel %vm333_vm2, %v160_v29, %v127_v19  ;;  %v204_v44 = vsel %vm329_vm1, %v161_v30, %v128_v20  ;;  %v205_v45 = vsel %vm333_vm2, %v162_v33, %v129_v21  ;;  %234 = vst [vmem:[%s643_s3 + $0x40] sm:$0xff] %v202_v42  ;;  %v206_v49 = vsel %vm329_vm1, %v163_v35, %v130_v22  ;;  %v59_v19 = vld [vmem:[%s642_s0 + $0xd8] sm:$0xff] }
  0x2e   :  { %235 = vst [vmem:[%s643_s3 + $0x48] sm:$0xff] %v203_v43  ;;  %236 = vst [vmem:[%s643_s3 + $0x50] sm:$0xff] %v204_v44  ;;  %v164_v50 = vmax.f32 %v131_v36, 0.0  ;;  %v165_v51 = vmax.f32 %v132_v37, 0.0  ;;  %v166_v52 = vmax.f32 %v133_v38, 0.0  ;;  %v91_v53 = vmul.f32 %v316_v26, %v48_v34 }
  0x2f   :  { %237 = vst [vmem:[%s643_s3 + $0x58] sm:$0xff] %v205_v45  ;;  %238 = vst [vmem:[%s643_s3 + $0x60] sm:$0xff] %v206_v49  ;;  %v92_v54 = vmul.f32 %v318_v27, %v49_v39  ;;  %v93_v55 = vmul.f32 %v316_v26, %v50_v40  ;;  %v94_v56 = vmul.f32 %v318_v27, %v51_v41  ;;  %v63_v39 = vld [vmem:[%s642_s0 + $0xf8] sm:$0xff] }
  0x30   :  { %v207_v60 = vsel %vm333_vm2, %v164_v50, %v131_v36  ;;  %v208_v61 = vsel %vm329_vm1, %v165_v51, %v132_v37  ;;  %v209_v62 = vsel %vm333_vm2, %v166_v52, %v133_v38  ;;  %v95_v63 = vmul.f32 %v316_v26, %v52_v46  ;;  %v61_v37 = vld [vmem:[%s642_s0 + $0xe8] sm:$0xff]  ;;  %v62_v38 = vld [vmem:[%s642_s0 + $0xf0] sm:$0xff] }
  0x31   :  { %239 = vst [vmem:[%s643_s3 + $0x68] sm:$0xff] %v207_v60  ;;  %240 = vst [vmem:[%s643_s3 + $0x70] sm:$0xff] %v208_v61  ;;  %v134_v0 = vadd.f32 %v362_v47, %v91_v53  ;;  %v135_v1 = vadd.f32 %v364_v48, %v92_v54  ;;  %v136_v2 = vadd.f32 %v362_v47, %v93_v55 }
  0x32   :  { %241 = vst [vmem:[%s643_s3 + $0x78] sm:$0xff] %v209_v62  ;;  %v137_v3 = vadd.f32 %v364_v48, %v94_v56  ;;  %v138_v4 = vadd.f32 %v362_v47, %v95_v63  ;;  %v96_v5 = vmul.f32 %v318_v27, %v53_v57  ;;  %v97_v6 = vmul.f32 %v316_v26, %v54_v58 }
  0x33   :  { %v98_v7 = vmul.f32 %v318_v27, %v55_v59  ;;  %v167_v8 = vmax.f32 %v134_v0, 0.0  ;;  %v168_v9 = vmax.f32 %v135_v1, 0.0  ;;  %v169_v10 = vmax.f32 %v136_v2, 0.0 }
  0x34   :  { %v170_v11 = vmax.f32 %v137_v3, 0.0  ;;  %v171_v13 = vmax.f32 %v138_v4, 0.0  ;;  %v139_v14 = vadd.f32 %v364_v48, %v96_v5  ;;  %v140_v15 = vadd.f32 %v362_v47, %v97_v6 }
  0x35   :  { %v141_v16 = vadd.f32 %v364_v48, %v98_v7  ;;  %v210_v20 = vsel %vm329_vm1, %v167_v8, %v134_v0  ;;  %v211_v21 = vsel %vm333_vm2, %v168_v9, %v135_v1  ;;  %v212_v22 = vsel %vm329_vm1, %v169_v10, %v136_v2 }
  0x36   :  { %v213_v23 = vsel %vm333_vm2, %v170_v11, %v137_v3  ;;  %242 = vst [vmem:[%s643_s3 + $0x80] sm:$0xff] %v210_v20  ;;  %243 = vst [vmem:[%s643_s3 + $0x88] sm:$0xff] %v211_v21  ;;  %v214_v25 = vsel %vm329_vm1, %v171_v13, %v138_v4  ;;  %v172_v28 = vmax.f32 %v139_v14, 0.0  ;;  %v173_v29 = vmax.f32 %v140_v15, 0.0 }
  0x37   :  { %244 = vst [vmem:[%s643_s3 + $0x90] sm:$0xff] %v212_v22  ;;  %245 = vst [vmem:[%s643_s3 + $0x98] sm:$0xff] %v213_v23  ;;  %v174_v30 = vmax.f32 %v141_v16, 0.0  ;;  %v99_v33 = vmul.f32 %v316_v26, %v56_v12  ;;  %v100_v34 = vmul.f32 %v318_v27, %v57_v17  ;;  %v101_v35 = vmul.f32 %v316_v26, %v58_v18 }
  0x38   :  { %246 = vst [vmem:[%s643_s3 + $0xa0] sm:$0xff] %v214_v25  ;;  %v102_v36 = vmul.f32 %v318_v27, %v59_v19  ;;  %v215_v40 = vsel %vm333_vm2, %v172_v28, %v139_v14  ;;  %v216_v41 = vsel %vm329_vm1, %v173_v29, %v140_v15  ;;  %v103_v43 = vmul.f32 %v316_v26, %v60_v24 }
  0x39   :  { %v217_v42 = vsel %vm333_vm2, %v174_v30, %v141_v16  ;;  %247 = vst [vmem:[%s643_s3 + $0xa8] sm:$0xff] %v215_v40  ;;  %248 = vst [vmem:[%s643_s3 + $0xb0] sm:$0xff] %v216_v41  ;;  %v142_v44 = vadd.f32 %v362_v47, %v99_v33  ;;  %v143_v45 = vadd.f32 %v364_v48, %v100_v34 }
  0x3a   :  { %249 = vst [vmem:[%s643_s3 + $0xb8] sm:$0xff] %v217_v42  ;;  %v144_v46 = vadd.f32 %v362_v47, %v101_v35  ;;  %v145_v49 = vadd.f32 %v364_v48, %v102_v36  ;;  %v146_v50 = vadd.f32 %v362_v47, %v103_v43  ;;  %v104_v51 = vmul.f32 %v318_v27, %v61_v37 }
  0x3b   :  { %v105_v52 = vmul.f32 %v316_v26, %v62_v38  ;;  %v106_v53 = vmul.f32 %v318_v27, %v63_v39  ;;  %v175_v54 = vmax.f32 %v142_v44, 0.0  ;;  %v176_v55 = vmax.f32 %v143_v45, 0.0 }
  0x3c   :  { %v177_v56 = vmax.f32 %v144_v46, 0.0  ;;  %v178_v57 = vmax.f32 %v145_v49, 0.0  ;;  %v179_v58 = vmax.f32 %v146_v50, 0.0  ;;  %v147_v59 = vadd.f32 %v364_v48, %v104_v51 }
  0x3d   :  { %v148_v60 = vadd.f32 %v362_v47, %v105_v52  ;;  %v149_v61 = vadd.f32 %v364_v48, %v106_v53  ;;  %v218_v62 = vsel %vm329_vm1, %v175_v54, %v142_v44  ;;  %v219_v63 = vsel %vm333_vm2, %v176_v55, %v143_v45 }
  0x3e   :  { %v220_v26 = vsel %vm329_vm1, %v177_v56, %v144_v46  ;;  %v221_v27 = vsel %vm333_vm2, %v178_v57, %v145_v49  ;;  %250 = vst [vmem:[%s643_s3 + $0xc0] sm:$0xff] %v218_v62  ;;  %251 = vst [vmem:[%s643_s3 + $0xc8] sm:$0xff] %v219_v63  ;;  %v222_v47 = vsel %vm329_vm1, %v179_v58, %v146_v50  ;;  %v180_v48 = vmax.f32 %v147_v59, 0.0 }
  0x3f   :  { %252 = vst [vmem:[%s643_s3 + $0xd0] sm:$0xff] %v220_v26  ;;  %253 = vst [vmem:[%s643_s3 + $0xd8] sm:$0xff] %v221_v27  ;;  %v181_v0 = vmax.f32 %v148_v60, 0.0  ;;  %v182_v1 = vmax.f32 %v149_v61, 0.0 }
  0x40   :  { %254 = vst [vmem:[%s643_s3 + $0xe0] sm:$0xff] %v222_v47  ;;  %v223_v2 = vsel %vm333_vm2, %v180_v48, %v147_v59 }
  0x41   :  { %v224_v3 = vsel %vm329_vm1, %v181_v0, %v148_v60  ;;  %v225_v4 = vsel %vm333_vm2, %v182_v1, %v149_v61  ;;  %255 = vst [vmem:[%s643_s3 + $0xe8] sm:$0xff] %v223_v2 }
  0x42   :  { %256 = vst [vmem:[%s643_s3 + $0xf0] sm:$0xff] %v224_v3  ;;  %257 = vst [vmem:[%s643_s3 + $0xf8] sm:$0xff] %v225_v4 }

// kernel: res_2d_forward.4
= control target key start
LH: loop header
LB: loop body
LE: loop exit
PB: predicated region body
PF: predicated region fallthrough
CT: control target
= control target key end

     0   :  { %v690_v1 = vmov 0   ;;  %v691_v25 = vmov 0.0   ;;  %s991_s1 = inlined_call_operand.vmem [shape: bf16[128,256], index: 1, kind: input, shape index: {}]   ;;  %s992_s0 = inlined_call_operand.vmem [shape: bf16[128,128], index: 0, kind: input, shape index: {}]   ;;  %s993_s3 = inlined_call_operand.vmem [shape: f32[8,256], index: 3, kind: output, shape index: {1}]   ;;  %s994_s2 = inlined_call_operand.vmem [shape: f32[128,256], index: 2, kind: output, shape index: {0}]  }
   0x1   :  { %v658_v0 = vld [vmem:[%s991_s1 + $0x74] ss:$8 sps:$4 sm:$0xff]   ;;  %206 = vmatprep.mubr.bf16.mxu0 %v690_v1  ;;  %246 = vmatprep.mubr.bf16.mxu1 %v690_v1  ;;  %v660_v2 = vld [vmem:[%s991_s1 + $0x70] ss:$8 sps:$4 sm:$0xff]   ;;  %v661_v3 = vld [vmem:[%s991_s1 + $0x64] ss:$8 sps:$4 sm:$0xff]   ;;  %554 = vst [vmem:[%s993_s3] sm:$0xff] %v691_v25 }
   0x2   :  { %174 = vmatprep.subr.bf16.mxu0 %v658_v0  ;;  %639 = vmatprep.subr.bf16.mxu1 %v658_v0  ;;  %v663_v4 = vld [vmem:[%s991_s1 + $0x60] ss:$8 sps:$4 sm:$0xff]   ;;  %v664_v5 = vld [vmem:[%s991_s1 + $0x54] ss:$8 sps:$4 sm:$0xff]   ;;  %v666_v6 = vld [vmem:[%s991_s1 + $0x50] ss:$8 sps:$4 sm:$0xff]  }
   0x3   :  { %175 = vmatpush1.bf16.msra.mxu0 %v660_v2  ;;  %647 = vmatpush1.bf16.msra.mxu1 %v660_v2  ;;  %v667_v7 = vld [vmem:[%s991_s1 + $0x44] ss:$8 sps:$4 sm:$0xff]   ;;  %v669_v8 = vld [vmem:[%s991_s1 + $0x40] ss:$8 sps:$4 sm:$0xff]   ;;  %v670_v9 = vld [vmem:[%s991_s1 + $0x34] ss:$8 sps:$4 sm:$0xff]  }
   0x4   :  { %176 = vmatprep.subr.bf16.mxu0 %v661_v3  ;;  %640 = vmatprep.subr.bf16.mxu1 %v661_v3  ;;  %v672_v10 = vld [vmem:[%s991_s1 + $0x30] ss:$8 sps:$4 sm:$0xff]   ;;  %v673_v11 = vld [vmem:[%s991_s1 + $0x24] ss:$8 sps:$4 sm:$0xff]   ;;  %v675_v12 = vld [vmem:[%s991_s1 + $0x20] ss:$8 sps:$4 sm:$0xff]  }
   0x5   :  { %v676_v13 = vld [vmem:[%s991_s1 + $0x14] ss:$8 sps:$4 sm:$0xff]   ;;  %v678_v14 = vld [vmem:[%s991_s1 + $0x10] ss:$8 sps:$4 sm:$0xff]   ;;  %v679_v15 = vld [vmem:[%s991_s1 + $0x4] ss:$8 sps:$4 sm:$0xff]  }
   0x6   :  { %v681_v16 = vld [vmem:[%s991_s1] ss:$8 sps:$4 sm:$0xff]   ;;  %v685_v21 = vld [vmem:[%s992_s0 + $0x10] sm:$0xff]   ;;  %v687_v23 = vld [vmem:[%s992_s0 + $0x18] sm:$0xff]   ;;  %555 = vst [vmem:[%s993_s3 + $0x8] sm:$0xff] %v691_v25 }
   0x7   :  { %177 = vmatpush1.bf16.msra.mxu0 %v663_v4  ;;  %648 = vmatpush1.bf16.msra.mxu1 %v663_v4  ;;  %v682_v17 = vld [vmem:[%s992_s0] sm:$0xff]   ;;  %v683_v19 = vld [vmem:[%s992_s0 + $0x8] sm:$0xff]   ;;  %v688_v22 = vld [vmem:[%s992_s0 + $0x30] sm:$0xff]  }
   0x8   :  { %178 = vmatprep.subr.bf16.mxu0 %v664_v5  ;;  %641 = vmatprep.subr.bf16.mxu1 %v664_v5  ;;  %v684_v18 = vld [vmem:[%s992_s0 + $0x20] sm:$0xff]   ;;  %v686_v20 = vld [vmem:[%s992_s0 + $0x28] sm:$0xff]   ;;  %v689_v24 = vld [vmem:[%s992_s0 + $0x38] sm:$0xff]  }
   0xb   :  { %179 = vmatpush1.bf16.msra.mxu0 %v666_v6  ;;  %649 = vmatpush1.bf16.msra.mxu1 %v666_v6 }
   0xc   :  { %180 = vmatprep.subr.bf16.mxu0 %v667_v7  ;;  %642 = vmatprep.subr.bf16.mxu1 %v667_v7 }
   0xf   :  { %181 = vmatpush1.bf16.msra.mxu0 %v669_v8  ;;  %650 = vmatpush1.bf16.msra.mxu1 %v669_v8 }
  0x10   :  { %182 = vmatprep.subr.bf16.mxu0 %v670_v9  ;;  %643 = vmatprep.subr.bf16.mxu1 %v670_v9 }
  0x13   :  { %183 = vmatpush1.bf16.msra.mxu0 %v672_v10  ;;  %651 = vmatpush1.bf16.msra.mxu1 %v672_v10 }
  0x14   :  { %184 = vmatprep.subr.bf16.mxu0 %v673_v11  ;;  %644 = vmatprep.subr.bf16.mxu1 %v673_v11 }
  0x17   :  { %185 = vmatpush1.bf16.msra.mxu0 %v675_v12  ;;  %652 = vmatpush1.bf16.msra.mxu1 %v675_v12 }
  0x18   :  { %186 = vmatprep.subr.bf16.mxu0 %v676_v13  ;;  %645 = vmatprep.subr.bf16.mxu1 %v676_v13 }
  0x1b   :  { %187 = vmatpush1.bf16.msra.mxu0 %v678_v14  ;;  %653 = vmatpush1.bf16.msra.mxu1 %v678_v14 }
  0x1c   :  { %188 = vmatprep.subr.bf16.mxu0 %v679_v15  ;;  %646 = vmatprep.subr.bf16.mxu1 %v679_v15 }
  0x1f   :  { %189 = vmatpush1.bf16.msra.mxu0 %v681_v16  ;;  %654 = vmatpush1.bf16.msra.mxu1 %v681_v16 }
  0x22   :  { %207 = vmatmul.mubr.bf16.vlgmr.msra.gmra.mxu0 %v682_v17  ;;  %247 = vmatmul.mubr.bf16.vlgmr.msra.gmra.mxu1 %v684_v18 }
  0x23   :  { %216 = vmatprep.mubr.bf16.mxu0 %v690_v1  ;;  %256 = vmatprep.mubr.bf16.mxu1 %v690_v1 }
  0x2a   :  { %217 = vmatmul.mubr.bf16.gmra.mxu0 %v683_v19  ;;  %257 = vmatmul.mubr.bf16.gmra.mxu1 %v686_v20 }
  0x2b   :  { %226 = vmatprep.mubr.bf16.mxu0 %v690_v1  ;;  %266 = vmatprep.mubr.bf16.mxu1 %v690_v1 }
  0x32   :  { %227 = vmatmul.mubr.bf16.gmra.mxu0 %v685_v21  ;;  %267 = vmatmul.mubr.bf16.gmra.mxu1 %v688_v22 }
  0x33   :  { %236 = vmatprep.mubr.bf16.mxu0 %v690_v1  ;;  %276 = vmatprep.mubr.bf16.mxu1 %v690_v1 }
  0x3a   :  { %237 = vmatmul.mubr.bf16.gmra.mxu0 %v687_v23  ;;  %277 = vmatmul.mubr.bf16.gmra.mxu1 %v689_v24 }
  0xe2   :  { %v208_v26 = vpop.f32.mrf.mxu0  ;;  %v799_v27 = vpop.f32.mrf.mxu1 }
  0xe3   :  { %287 = vst [vmem:[%s994_s2] sm:$0xff] %v208_v26  ;;  %303 = vst [vmem:[%s994_s2 + $0x80] sm:$0xff] %v799_v27  ;;  %v476_v46 = vmul.f32 %v208_v26, %v208_v26 }
  0xe4   :  { %v210_v28 = vpop.f32.mrf.mxu0  ;;  %v808_v29 = vpop.f32.mrf.mxu1 }
  0xe5   :  { %288 = vst [vmem:[%s994_s2 + $0x8] sm:$0xff] %v210_v28  ;;  %304 = vst [vmem:[%s994_s2 + $0x88] sm:$0xff] %v808_v29  ;;  %v477_v49 = vmul.f32 %v210_v28, %v210_v28 }
  0xe6   :  { %v212_v30 = vpop.f32.mrf.mxu0  ;;  %v817_v31 = vpop.f32.mrf.mxu1 }
  0xe7   :  { %289 = vst [vmem:[%s994_s2 + $0x10] sm:$0xff] %v212_v30  ;;  %305 = vst [vmem:[%s994_s2 + $0x90] sm:$0xff] %v817_v31  ;;  %v478_v42 = vmul.f32 %v212_v30, %v212_v30  ;;  %v434_v47 = vadd.f32 %v212_v30, %v208_v26 }
  0xe8   :  { %v214_v32 = vpop.f32.mrf.mxu0  ;;  %v826_v33 = vpop.f32.mrf.mxu1 }
  0xe9   :  { %290 = vst [vmem:[%s994_s2 + $0x18] sm:$0xff] %v214_v32  ;;  %306 = vst [vmem:[%s994_s2 + $0x98] sm:$0xff] %v826_v33  ;;  %v479_v43 = vmul.f32 %v214_v32, %v214_v32  ;;  %v508_v53 = vadd.f32 %v478_v42, %v476_v46  ;;  %v455_v54 = vadd.f32 %v214_v32, %v210_v28 }
  0xea   :  { %v218_v34 = vpop.f32.mrf.mxu0  ;;  %v835_v35 = vpop.f32.mrf.mxu1 }
  0xeb   :  { %291 = vst [vmem:[%s994_s2 + $0x20] sm:$0xff] %v218_v34  ;;  %307 = vst [vmem:[%s994_s2 + $0xa0] sm:$0xff] %v835_v35  ;;  %v480_v48 = vmul.f32 %v218_v34, %v218_v34  ;;  %v435_v55 = vadd.f32 %v434_v47, %v218_v34  ;;  %v529_v57 = vadd.f32 %v479_v43, %v477_v49 }
  0xec   :  { %v220_v36 = vpop.f32.mrf.mxu0  ;;  %v844_v37 = vpop.f32.mrf.mxu1  ;;  %v494_v49 = vmul.f32 %v817_v31, %v817_v31 }
  0xed   :  { %292 = vst [vmem:[%s994_s2 + $0x28] sm:$0xff] %v220_v36  ;;  %308 = vst [vmem:[%s994_s2 + $0xa8] sm:$0xff] %v844_v37  ;;  %v481_v50 = vmul.f32 %v220_v36, %v220_v36  ;;  %v509_v61 = vadd.f32 %v508_v53, %v480_v48  ;;  %v456_v62 = vadd.f32 %v455_v54, %v220_v36 }
  0xee   :  { %v222_v38 = vpop.f32.mrf.mxu0  ;;  %v853_v39 = vpop.f32.mrf.mxu1  ;;  %v492_v36 = vmul.f32 %v799_v27, %v799_v27  ;;  %v493_v48 = vmul.f32 %v808_v29, %v808_v29  ;;  %v495_v54 = vmul.f32 %v826_v33, %v826_v33 }
  0xef   :  { %293 = vst [vmem:[%s994_s2 + $0x30] sm:$0xff] %v222_v38  ;;  %309 = vst [vmem:[%s994_s2 + $0xb0] sm:$0xff] %v853_v39  ;;  %v482_v56 = vmul.f32 %v222_v38, %v222_v38  ;;  %v436_v63 = vadd.f32 %v435_v55, %v222_v38  ;;  %v530_v1 = vadd.f32 %v529_v57, %v481_v50 }
  0xf0   :  { %v224_v40 = vpop.f32.mrf.mxu0  ;;  %v862_v41 = vpop.f32.mrf.mxu1  ;;  %v496_v55 = vmul.f32 %v835_v35, %v835_v35 }
  0xf1   :  { %294 = vst [vmem:[%s994_s2 + $0x38] sm:$0xff] %v224_v40  ;;  %310 = vst [vmem:[%s994_s2 + $0xb8] sm:$0xff] %v862_v41  ;;  %v483_v58 = vmul.f32 %v224_v40, %v224_v40  ;;  %v510_v5 = vadd.f32 %v509_v61, %v482_v56  ;;  %v457_v6 = vadd.f32 %v456_v62, %v224_v40 }
  0xf2   :  { %v228_v44 = vpop.f32.mrf.mxu0  ;;  %v871_v45 = vpop.f32.mrf.mxu1  ;;  %v497_v61 = vmul.f32 %v844_v37, %v844_v37 }
  0xf3   :  { %295 = vst [vmem:[%s994_s2 + $0x40] sm:$0xff] %v228_v44  ;;  %311 = vst [vmem:[%s994_s2 + $0xc0] sm:$0xff] %v871_v45  ;;  %v484_v0 = vmul.f32 %v228_v44, %v228_v44  ;;  %v437_v7 = vadd.f32 %v436_v63, %v228_v44  ;;  %v531_v9 = vadd.f32 %v530_v1, %v483_v58 }
  0xf4   :  { %v230_v51 = vpop.f32.mrf.mxu0  ;;  %v880_v52 = vpop.f32.mrf.mxu1  ;;  %v499_v1 = vmul.f32 %v862_v41, %v862_v41 }
  0xf5   :  { %296 = vst [vmem:[%s994_s2 + $0x48] sm:$0xff] %v230_v51  ;;  %312 = vst [vmem:[%s994_s2 + $0xc8] sm:$0xff] %v880_v52  ;;  %v485_v2 = vmul.f32 %v230_v51, %v230_v51  ;;  %v511_v13 = vadd.f32 %v510_v5, %v484_v0  ;;  %v458_v14 = vadd.f32 %v457_v6, %v230_v51 }
  0xf6   :  { %v232_v59 = vpop.f32.mrf.mxu0  ;;  %v889_v60 = vpop.f32.mrf.mxu1  ;;  %v501_v6 = vmul.f32 %v880_v52, %v880_v52 }
  0xf7   :  { %297 = vst [vmem:[%s994_s2 + $0x50] sm:$0xff] %v232_v59  ;;  %313 = vst [vmem:[%s994_s2 + $0xd0] sm:$0xff] %v889_v60  ;;  %v486_v8 = vmul.f32 %v232_v59, %v232_v59  ;;  %v438_v15 = vadd.f32 %v437_v7, %v232_v59  ;;  %v532_v17 = vadd.f32 %v531_v9, %v485_v2 }
  0xf8   :  { %v234_v3 = vpop.f32.mrf.mxu0  ;;  %v898_v4 = vpop.f32.mrf.mxu1 }
  0xf9   :  { %298 = vst [vmem:[%s994_s2 + $0x58] sm:$0xff] %v234_v3  ;;  %314 = vst [vmem:[%s994_s2 + $0xd8] sm:$0xff] %v898_v4  ;;  %v487_v10 = vmul.f32 %v234_v3, %v234_v3  ;;  %v512_v20 = vadd.f32 %v511_v13, %v486_v8  ;;  %v459_v21 = vadd.f32 %v458_v14, %v234_v3 }
  0xfa   :  { %v238_v11 = vpop.f32.mrf.mxu0  ;;  %v907_v12 = vpop.f32.mrf.mxu1 }
  0xfb   :  { %299 = vst [vmem:[%s994_s2 + $0x60] sm:$0xff] %v238_v11  ;;  %v488_v16 = vmul.f32 %v238_v11, %v238_v11  ;;  %315 = vst [vmem:[%s994_s2 + $0xe0] sm:$0xff] %v907_v12  ;;  %v439_v22 = vadd.f32 %v438_v15, %v238_v11  ;;  %v533_v24 = vadd.f32 %v532_v17, %v487_v10 }
  0xfc   :  { %v240_v18 = vpop.f32.mrf.mxu0  ;;  %v916_v19 = vpop.f32.mrf.mxu1  ;;  %v503_v10 = vmul.f32 %v898_v4, %v898_v4 }
  0xfd   :  { %300 = vst [vmem:[%s994_s2 + $0x68] sm:$0xff] %v240_v18  ;;  %v489_v23 = vmul.f32 %v240_v18, %v240_v18  ;;  %316 = vst [vmem:[%s994_s2 + $0xe8] sm:$0xff] %v916_v19  ;;  %v513_v28 = vadd.f32 %v512_v20, %v488_v16  ;;  %v460_v30 = vadd.f32 %v459_v21, %v240_v18 }
  0xfe   :  { %v242_v25 = vpop.f32.mrf.mxu0  ;;  %v282_v26 = vpop.f32.mrf.mxu1  ;;  %v505_v15 = vmul.f32 %v916_v19, %v916_v19 }
  0xff   :  { %301 = vst [vmem:[%s994_s2 + $0x70] sm:$0xff] %v242_v25  ;;  %v440_v32 = vadd.f32 %v439_v22, %v242_v25  ;;  %v490_v34 = vmul.f32 %v242_v25, %v242_v25  ;;  %317 = vst [vmem:[%s994_s2 + $0xf0] sm:$0xff] %v282_v26  ;;  %v534_v38 = vadd.f32 %v533_v24, %v489_v23 }
 0x100   :  { %v244_v40 = vpop.f32.mrf.mxu0  ;;  %v284_v42 = vpop.f32.mrf.mxu1 }
 0x101   :  { %v441_v43 = vadd.f32 %v440_v32, %v799_v27  ;;  %v514_v44 = vadd.f32 %v513_v28, %v490_v34  ;;  %302 = vst [vmem:[%s994_s2 + $0x78] sm:$0xff] %v244_v40  ;;  %v461_v46 = vadd.f32 %v460_v30, %v244_v40  ;;  %v491_v47 = vmul.f32 %v244_v40, %v244_v40 }
 0x102   :  { %318 = vst [vmem:[%s994_s2 + $0xf8] sm:$0xff] %v284_v42  ;;  %v507_v20 = vmul.f32 %v284_v42, %v284_v42  ;;  %v692_v32 = vmov 1966171168   ;;  %v563_v34 = vlaneseq }
 0x103   :  { %v442_v50 = vadd.f32 %v441_v43, %v817_v31  ;;  %v515_v27 = vadd.f32 %v514_v44, %v492_v36  ;;  %v462_v51 = vadd.f32 %v461_v46, %v808_v29  ;;  %v535_v53 = vadd.f32 %v534_v38, %v491_v47 }
 0x104   :  { %v498_v31 = vmul.f32 %v853_v39, %v853_v39  ;;  %vm578_vm0 = vcmp.lt.s32.totalorder %v563_v34, 256 }
 0x105   :  { %v516_v56 = vadd.f32 %v515_v27, %v494_v49  ;;  %v463_v57 = vadd.f32 %v462_v51, %v826_v33  ;;  %v536_v58 = vadd.f32 %v535_v53, %v493_v48  ;;  %v443_v59 = vadd.f32 %v442_v50, %v835_v35 }
 0x106   :  { %v500_v33 = vmul.f32 %v871_v45, %v871_v45  ;;  %v564_v48 = vshrl.u32 %v563_v34, 7 }
 0x107   :  { %v464_v29 = vadd.f32 %v463_v57, %v844_v37  ;;  %v537_v62 = vadd.f32 %v536_v58, %v495_v54  ;;  %v444_v63 = vadd.f32 %v443_v59, %v853_v39  ;;  %v517_v0 = vadd.f32 %v516_v56, %v496_v55 }
 0x108   :  { %v502_v37 = vmul.f32 %v889_v60, %v889_v60 }
 0x109   :  { %v538_v2 = vadd.f32 %v537_v62, %v497_v61  ;;  %v445_v35 = vadd.f32 %v444_v63, %v871_v45  ;;  %v518_v3 = vadd.f32 %v517_v0, %v498_v31  ;;  %v465_v5 = vadd.f32 %v464_v29, %v862_v41  ;;  %v556_v63 = vld [vmem:[%s993_s3] ss:$8 sm:$0x3] }
 0x10a   :  { %v504_v45 = vmul.f32 %v907_v12, %v907_v12 }
 0x10b   :  { %v446_v39 = vadd.f32 %v445_v35, %v889_v60  ;;  %v519_v7 = vadd.f32 %v518_v3, %v500_v33  ;;  %v466_v8 = vadd.f32 %v465_v5, %v880_v52  ;;  %v539_v9 = vadd.f32 %v538_v2, %v499_v1  ;;  %v637_v33 = vld [vmem:[%s993_s3 + $0x1] ss:$8 sm:$0x3] }
 0x10c   :  { %v506_v60 = vmul.f32 %v282_v26, %v282_v26 }
 0x10d   :  { %v520_v11 = vadd.f32 %v519_v7, %v502_v37  ;;  %v467_v41 = vadd.f32 %v466_v8, %v898_v4  ;;  %v540_v13 = vadd.f32 %v539_v9, %v501_v6  ;;  %v447_v14 = vadd.f32 %v446_v39, %v907_v12 }
 0x10e   :  { %v561_v12 = vunpack.c.l.s4 %v692_v32 }
 0x10f   :  { %v541_v16 = vadd.f32 %v540_v13, %v503_v10  ;;  %v521_v17 = vadd.f32 %v520_v11, %v504_v45  ;;  %v468_v52 = vadd.f32 %v467_v41, %v916_v19  ;;  %v448_v18 = vadd.f32 %v447_v14, %v282_v26 }
 0x110   :  { %v562_v47 = vunpack.c.0.s8 %v561_v12 }
 0x111   :  { %v542_v21 = vadd.f32 %v541_v16, %v505_v15  ;;  %v449_v22 = vrot.slane %v448_v18, 4  ;;  %v522_v23 = vadd.f32 %v521_v17, %v506_v60  ;;  %v469_v24 = vadd.f32 %v468_v52, %v284_v42 }
 0x112   :  { %v565_v58 = vsub.s32 %v562_v47, %v564_v48 }
 0x113   :  { %v450_v25 = vadd.f32 %v449_v22, %v448_v18  ;;  %v523_v28 = vrot.slane %v522_v23, 4  ;;  %v470_v4 = vrot.slane %v469_v24, 4  ;;  %v543_v30 = vadd.f32 %v542_v21, %v507_v20 }
 0x115   :  { %v451_v36 = vrot.slane %v450_v25, 2  ;;  %v524_v38 = vadd.f32 %v523_v28, %v522_v23  ;;  %v471_v40 = vadd.f32 %v470_v4, %v469_v24  ;;  %v544_v43 = vrot.slane %v543_v30, 4 }
 0x117   :  { %v452_v44 = vadd.f32 %v451_v36, %v450_v25  ;;  %v525_v46 = vrot.slane %v524_v38, 2  ;;  %v472_v19 = vrot.slane %v471_v40, 2  ;;  %v545_v26 = vadd.f32 %v544_v43, %v543_v30 }
 0x119   :  { %v453_v49 = vrot.slane %v452_v44, 1  ;;  %v526_v50 = vadd.f32 %v525_v46, %v524_v38  ;;  %v473_v42 = vadd.f32 %v472_v19, %v471_v40  ;;  %v546_v27 = vrot.slane %v545_v26, 2 }
 0x11b   :  { %v527_v51 = vrot.slane %v526_v50, 1  ;;  %v474_v53 = vrot.slane %v473_v42, 1  ;;  %v547_v54 = vadd.f32 %v546_v27, %v545_v26  ;;  %v454_v55 = vadd.f32 %v453_v49, %v452_v44 }
 0x11d   :  { %v475_v56 = vadd.f32 %v474_v53, %v473_v42  ;;  %v548_v57 = vrot.slane %v547_v54, 1  ;;  %v528_v59 = vadd.f32 %v527_v51, %v526_v50 }
 0x11f   :  { %v549_v61 = vadd.f32 %v548_v57, %v547_v54  ;;  %v559_v31 = vcombine.low %v454_v55, %v475_v56 }
 0x121   :  { %v566_v29 = vrot.slane %v559_v31, %v565_v58  ;;  %v586_v62 = vcombine.low %v528_v59, %v549_v61 }
 0x123   :  { %v573_v0 = vrot.slane %v566_v29, %v565_v58  ;;  %v593_v1 = vrot.slane %v586_v62, %v565_v58 }
 0x125   :  { %v575_v2 = vadd.f32 %v573_v0, %v556_v63  ;;  %v600_v35 = vrot.slane %v593_v1, %v565_v58 }
 0x127   :  { %580 = vst.msk [vmem:[%s993_s3] ss:$8 sm:$0x3] %vm578_vm0, %v575_v2  ;;  %v602_v3 = vadd.f32 %v637_v33, %v600_v35 }
 0x129   :  { %638 = vst.msk [vmem:[%s993_s3 + $0x1] ss:$8 sm:$0x3] %vm578_vm0, %v602_v3 }

// kernel: res_2d_forward.6
= control target key start
LH: loop header
LB: loop body
LE: loop exit
PB: predicated region body
PF: predicated region fallthrough
CT: control target
= control target key end

     0   :  { %v528_v16 = vmov 0.0   ;;  %s660_s1 = inlined_call_operand.vmem [shape: bf16[128,128], index: 1, kind: input, shape index: {}]   ;;  %s661_s0 = inlined_call_operand.vmem [shape: bf16[128,128], index: 0, kind: input, shape index: {}]   ;;  %s662_s3 = inlined_call_operand.vmem [shape: f32[8,128], index: 3, kind: output, shape index: {1}]   ;;  %s663_s2 = inlined_call_operand.vmem [shape: f32[128,128], index: 2, kind: output, shape index: {0}]  }
   0x1   :  { %v512_v0 = vld [vmem:[%s660_s1 + $0x38] sm:$0xff]   ;;  %v513_v1 = vld [vmem:[%s660_s1 + $0x30] sm:$0xff]   ;;  %v514_v2 = vld [vmem:[%s660_s1 + $0x28] sm:$0xff]   ;;  %416 = vst [vmem:[%s662_s3] sm:$0xff] %v528_v16 }
   0x2   :  { %463 = vmatprep.subr.bf16.mxu0 %v512_v0  ;;  %495 = vmatprep.subr.bf16.mxu1 %v512_v0  ;;  %v515_v3 = vld [vmem:[%s660_s1 + $0x20] sm:$0xff]   ;;  %v516_v5 = vld [vmem:[%s660_s1 + $0x18] sm:$0xff]   ;;  %v517_v7 = vld [vmem:[%s660_s1 + $0x10] sm:$0xff]  }
   0x3   :  { %464 = vmatpush3.bf16.msra.mxu0 %v512_v0  ;;  %503 = vmatpush3.bf16.msra.mxu1 %v512_v0  ;;  %v520_v4 = vld [vmem:[%s661_s0] sm:$0xff]   ;;  %v518_v8 = vld [vmem:[%s660_s1 + $0x8] sm:$0xff]   ;;  %v522_v12 = vld [vmem:[%s661_s0 + $0x10] sm:$0xff]  }
   0x4   :  { %465 = vmatprep.subr.bf16.mxu0 %v513_v1  ;;  %496 = vmatprep.subr.bf16.mxu1 %v513_v1  ;;  %v524_v6 = vld [vmem:[%s661_s0 + $0x20] sm:$0xff]   ;;  %v521_v10 = vld [vmem:[%s661_s0 + $0x8] sm:$0xff]   ;;  %v526_v13 = vld [vmem:[%s661_s0 + $0x30] sm:$0xff]  }
   0x5   :  { %479 = vmatprep.mubr.bf16.mxu0 %v520_v4  ;;  %487 = vmatprep.mubr.bf16.mxu1 %v524_v6  ;;  %v519_v9 = vld [vmem:[%s660_s1] sm:$0xff]   ;;  %v525_v11 = vld [vmem:[%s661_s0 + $0x28] sm:$0xff]   ;;  %v523_v14 = vld [vmem:[%s661_s0 + $0x18] sm:$0xff]  }
   0x6   :  { %v527_v15 = vld [vmem:[%s661_s0 + $0x38] sm:$0xff]  }
   0x7   :  { %466 = vmatpush3.bf16.msra.mxu0 %v513_v1  ;;  %504 = vmatpush3.bf16.msra.mxu1 %v513_v1 }
   0x8   :  { %467 = vmatprep.subr.bf16.mxu0 %v514_v2  ;;  %497 = vmatprep.subr.bf16.mxu1 %v514_v2 }
   0xb   :  { %468 = vmatpush3.bf16.msra.mxu0 %v514_v2  ;;  %505 = vmatpush3.bf16.msra.mxu1 %v514_v2 }
   0xc   :  { %469 = vmatprep.subr.bf16.mxu0 %v515_v3  ;;  %498 = vmatprep.subr.bf16.mxu1 %v515_v3 }
   0xf   :  { %470 = vmatpush3.bf16.msra.mxu0 %v515_v3  ;;  %506 = vmatpush3.bf16.msra.mxu1 %v515_v3 }
  0x10   :  { %471 = vmatprep.subr.bf16.mxu0 %v516_v5  ;;  %499 = vmatprep.subr.bf16.mxu1 %v516_v5 }
  0x13   :  { %472 = vmatpush3.bf16.msra.mxu0 %v516_v5  ;;  %507 = vmatpush3.bf16.msra.mxu1 %v516_v5 }
  0x14   :  { %473 = vmatprep.subr.bf16.mxu0 %v517_v7  ;;  %500 = vmatprep.subr.bf16.mxu1 %v517_v7 }
  0x17   :  { %474 = vmatpush3.bf16.msra.mxu0 %v517_v7  ;;  %508 = vmatpush3.bf16.msra.mxu1 %v517_v7 }
  0x18   :  { %475 = vmatprep.subr.bf16.mxu0 %v518_v8  ;;  %501 = vmatprep.subr.bf16.mxu1 %v518_v8 }
  0x1b   :  { %476 = vmatpush3.bf16.msra.mxu0 %v518_v8  ;;  %509 = vmatpush3.bf16.msra.mxu1 %v518_v8 }
  0x1c   :  { %477 = vmatprep.subr.bf16.mxu0 %v519_v9  ;;  %502 = vmatprep.subr.bf16.mxu1 %v519_v9 }
  0x1f   :  { %478 = vmatpush3.bf16.msra.mxu0 %v519_v9  ;;  %510 = vmatpush3.bf16.msra.mxu1 %v519_v9 }
  0x22   :  { %480 = vmatmul.mubr.bf16.vlgmr.msra.gmra.mxu0 %v521_v10  ;;  %488 = vmatmul.mubr.bf16.vlgmr.msra.gmra.mxu1 %v525_v11 }
  0x23   :  { %483 = vmatprep.mubr.bf16.mxu0 %v522_v12  ;;  %491 = vmatprep.mubr.bf16.mxu1 %v526_v13 }
  0x2a   :  { %484 = vmatmul.mubr.bf16.gmra.mxu0 %v523_v14  ;;  %492 = vmatmul.mubr.bf16.gmra.mxu1 %v527_v15 }
  0xe2   :  { %v481_v17 = vpop.f32.mrf.mxu0  ;;  %v489_v18 = vpop.f32.mrf.mxu1 }
  0xe3   :  { %241 = vst [vmem:[%s663_s2 + $0x10] sm:$0xff] %v481_v17  ;;  %249 = vst [vmem:[%s663_s2 + $0x50] sm:$0xff] %v489_v18  ;;  %v377_v30 = vmul.f32 %v481_v17, %v481_v17  ;;  %v385_v60 = vmul.f32 %v489_v18, %v489_v18 }
  0xe4   :  { %v176_v19 = vpop.f32.mrf.mxu0  ;;  %v208_v20 = vpop.f32.mrf.mxu1 }
  0xe5   :  { %239 = vst [vmem:[%s663_s2] sm:$0xff] %v176_v19  ;;  %247 = vst [vmem:[%s663_s2 + $0x40] sm:$0xff] %v208_v20  ;;  %v375_v25 = vmul.f32 %v176_v19, %v176_v19  ;;  %v383_v54 = vmul.f32 %v208_v20, %v208_v20 }
  0xe6   :  { %v482_v21 = vpop.f32.mrf.mxu0  ;;  %v490_v22 = vpop.f32.mrf.mxu1 }
  0xe7   :  { %242 = vst [vmem:[%s663_s2 + $0x18] sm:$0xff] %v482_v21  ;;  %250 = vst [vmem:[%s663_s2 + $0x58] sm:$0xff] %v490_v22  ;;  %v378_v35 = vmul.f32 %v482_v21, %v482_v21  ;;  %v386_v63 = vmul.f32 %v490_v22, %v490_v22 }
  0xe8   :  { %v179_v23 = vpop.f32.mrf.mxu0  ;;  %v211_v24 = vpop.f32.mrf.mxu1 }
  0xe9   :  { %240 = vst [vmem:[%s663_s2 + $0x8] sm:$0xff] %v179_v23  ;;  %v354_v26 = vadd.f32 %v179_v23, %v176_v19  ;;  %v376_v27 = vmul.f32 %v179_v23, %v179_v23  ;;  %248 = vst [vmem:[%s663_s2 + $0x48] sm:$0xff] %v211_v24  ;;  %v384_v58 = vmul.f32 %v211_v24, %v211_v24 }
  0xea   :  { %v485_v28 = vpop.f32.mrf.mxu0  ;;  %v493_v29 = vpop.f32.mrf.mxu1 }
  0xeb   :  { %v355_v31 = vadd.f32 %v481_v17, %v354_v26  ;;  %v391_v32 = vadd.f32 %v376_v27, %v375_v25  ;;  %245 = vst [vmem:[%s663_s2 + $0x30] sm:$0xff] %v485_v28  ;;  %253 = vst [vmem:[%s663_s2 + $0x70] sm:$0xff] %v493_v29  ;;  %v381_v48 = vmul.f32 %v485_v28, %v485_v28  ;;  %v420_v27 = vld [vmem:[%s662_s3 + $0x1] sm:$0x1] }
  0xec   :  { %v192_v33 = vpop.f32.mrf.mxu0  ;;  %v224_v34 = vpop.f32.mrf.mxu1  ;;  %v389_v8 = vmul.f32 %v493_v29, %v493_v29 }
  0xed   :  { %v392_v36 = vadd.f32 %v391_v32, %v377_v30  ;;  %243 = vst [vmem:[%s663_s2 + $0x20] sm:$0xff] %v192_v33  ;;  %v356_v37 = vadd.f32 %v482_v21, %v355_v31  ;;  %251 = vst [vmem:[%s663_s2 + $0x60] sm:$0xff] %v224_v34  ;;  %v379_v41 = vmul.f32 %v192_v33, %v192_v33 }
  0xee   :  { %v486_v38 = vpop.f32.mrf.mxu0  ;;  %v494_v39 = vpop.f32.mrf.mxu1  ;;  %v387_v3 = vmul.f32 %v224_v34, %v224_v34 }
  0xef   :  { %v357_v40 = vadd.f32 %v356_v37, %v192_v33  ;;  %v393_v42 = vadd.f32 %v392_v36, %v378_v35  ;;  %246 = vst [vmem:[%s663_s2 + $0x38] sm:$0xff] %v486_v38  ;;  %254 = vst [vmem:[%s663_s2 + $0x78] sm:$0xff] %v494_v39  ;;  %v382_v51 = vmul.f32 %v486_v38, %v486_v38 }
  0xf0   :  { %v195_v43 = vpop.f32.mrf.mxu0  ;;  %v227_v44 = vpop.f32.mrf.mxu1  ;;  %v390_v11 = vmul.f32 %v494_v39, %v494_v39 }
  0xf1   :  { %v394_v45 = vadd.f32 %v393_v42, %v379_v41  ;;  %244 = vst [vmem:[%s663_s2 + $0x28] sm:$0xff] %v195_v43  ;;  %v358_v46 = vadd.f32 %v357_v40, %v195_v43  ;;  %v380_v47 = vmul.f32 %v195_v43, %v195_v43  ;;  %252 = vst [vmem:[%s663_s2 + $0x68] sm:$0xff] %v227_v44 }
  0xf2   :  { %v388_v7 = vmul.f32 %v227_v44, %v227_v44 }
  0xf3   :  { %v359_v49 = vadd.f32 %v485_v28, %v358_v46  ;;  %v395_v50 = vadd.f32 %v394_v45, %v380_v47 }
  0xf5   :  { %v360_v52 = vadd.f32 %v486_v38, %v359_v49  ;;  %v396_v53 = vadd.f32 %v395_v50, %v381_v48 }
  0xf7   :  { %v397_v55 = vadd.f32 %v396_v53, %v382_v51  ;;  %v361_v56 = vadd.f32 %v360_v52, %v208_v20 }
  0xf9   :  { %v362_v57 = vadd.f32 %v361_v56, %v211_v24  ;;  %v398_v59 = vadd.f32 %v397_v55, %v383_v54  ;;  %v417_v24 = vld [vmem:[%s662_s3] sm:$0x1] }
  0xfb   :  { %v363_v61 = vadd.f32 %v489_v18, %v362_v57  ;;  %v399_v62 = vadd.f32 %v398_v59, %v384_v58 }
  0xfd   :  { %v400_v0 = vadd.f32 %v399_v62, %v385_v60  ;;  %v364_v1 = vadd.f32 %v490_v22, %v363_v61 }
  0xff   :  { %v365_v2 = vadd.f32 %v364_v1, %v224_v34  ;;  %v401_v4 = vadd.f32 %v400_v0, %v386_v63 }
 0x101   :  { %v402_v5 = vadd.f32 %v401_v4, %v387_v3  ;;  %v366_v6 = vadd.f32 %v365_v2, %v227_v44 }
 0x103   :  { %v367_v9 = vadd.f32 %v493_v29, %v366_v6  ;;  %v403_v10 = vadd.f32 %v402_v5, %v388_v7 }
 0x105   :  { %v368_v12 = vadd.f32 %v494_v39, %v367_v9  ;;  %v404_v13 = vadd.f32 %v403_v10, %v389_v8 }
 0x107   :  { %v369_v14 = vrot.slane %v368_v12, 4  ;;  %v405_v15 = vadd.f32 %v404_v13, %v390_v11 }
 0x109   :  { %v370_v16 = vadd.f32 %v369_v14, %v368_v12  ;;  %v406_v17 = vrot.slane %v405_v15, 4 }
 0x10b   :  { %v371_v18 = vrot.slane %v370_v16, 2  ;;  %v407_v19 = vadd.f32 %v406_v17, %v405_v15 }
 0x10d   :  { %v372_v20 = vadd.f32 %v371_v18, %v370_v16  ;;  %v408_v21 = vrot.slane %v407_v19, 2 }
 0x10f   :  { %v373_v22 = vrot.slane %v372_v20, 1  ;;  %v409_v23 = vadd.f32 %v408_v21, %v407_v19 }
 0x111   :  { %v374_v25 = vadd.f32 %v373_v22, %v372_v20  ;;  %v410_v26 = vrot.slane %v409_v23, 1 }
 0x113   :  { %v411_v28 = vadd.f32 %v410_v26, %v409_v23  ;;  %v418_v29 = vadd.f32 %v417_v24, %v374_v25 }
 0x115   :  { %419 = vst [vmem:[%s662_s3] sm:$0x1] %v418_v29  ;;  %v421_v30 = vadd.f32 %v420_v27, %v411_v28 }
 0x117   :  { %422 = vst [vmem:[%s662_s3 + $0x1] sm:$0x1] %v421_v30 }

// kernel: res_2d_forward.7
= control target key start
LH: loop header
LB: loop body
LE: loop exit
PB: predicated region body
PF: predicated region fallthrough
CT: control target
= control target key end

     0   :  { %v48_v8 = vlaneseq  ;;  %v182_v11 = vmov 0   ;;  %s439_s1 = inlined_call_operand.vmem [shape: f32[8,128], index: 1, kind: input, shape index: {}]   ;;  %s440_s2 = inlined_call_operand.vmem [shape: f32[8,128], index: 2, kind: input, shape index: {}]   ;;  %s441_s0 = inlined_call_operand.vmem [shape: f32[128,128], index: 0, kind: input, shape index: {}]   ;;  %s442_s3 = inlined_call_operand.vmem [shape: f32[128,128], index: 3, kind: input, shape index: {}]   ;;  %s443_s4 = inlined_call_operand.vmem [shape: f32[128,128], index: 4, kind: output, shape index: {}]  }
   0x1   :  { %v17_v0 = vld [vmem:[%s439_s1] sm:$0x1]  ;;  %v19_v1 = vld [vmem:[%s439_s1 + $0x1] sm:$0x1]  ;;  %v26_v9 = vld [vmem:[%s440_s2 + $0x2] sm:$0x1] }
   0x2   :  { %v18_v2 = vmul.f32 0.0078125, %v17_v0  ;;  %v20_v3 = vmul.f32 0.0078125, %v19_v1  ;;  %v49_v10 = vshrl.u32 %v48_v8, 7  ;;  %vm120_vm0 = vcmp.gt.f32.partialorder %v26_v9, 0.0  ;;  %v24_v13 = vld [vmem:[%s440_s2] sm:$0x1] }
   0x3   :  { %v137_v12 = vsel %vm120_vm0, 1, %v182_v11  ;;  %v25_v17 = vld [vmem:[%s440_s2 + $0x1] sm:$0x1]  ;;  %v33_v20 = vld [vmem:[%s441_s0 + $0x8] sm:$0xff]  ;;  %v34_v21 = vld [vmem:[%s441_s0 + $0x10] sm:$0xff] }
   0x4   :  { %v21_v4 = vmul.f32 %v18_v2, %v18_v2  ;;  %v50_v14 = vsub.s32 0, %v49_v10  ;;  %v32_v19 = vld [vmem:[%s441_s0] sm:$0xff]  ;;  %v35_v22 = vld [vmem:[%s441_s0 + $0x18] sm:$0xff]  ;;  %v37_v26 = vld [vmem:[%s441_s0 + $0x28] sm:$0xff] }
   0x5   :  { %v36_v23 = vld [vmem:[%s441_s0 + $0x20] sm:$0xff]  ;;  %v38_v27 = vld [vmem:[%s441_s0 + $0x30] sm:$0xff]  ;;  %v39_v28 = vld [vmem:[%s441_s0 + $0x38] sm:$0xff] }
   0x6   :  { %v22_v5 = vsub.f32 %v20_v3, %v21_v4  ;;  %v141_v16 = vrot.slane %v137_v12, %v50_v14  ;;  %v40_v30 = vld [vmem:[%s441_s0 + $0x40] sm:$0xff]  ;;  %v41_v31 = vld [vmem:[%s441_s0 + $0x48] sm:$0xff]  ;;  %v42_v32 = vld [vmem:[%s441_s0 + $0x50] sm:$0xff] }
   0x7   :  { %v43_v37 = vld [vmem:[%s441_s0 + $0x58] sm:$0xff]  ;;  %v44_v38 = vld [vmem:[%s441_s0 + $0x60] sm:$0xff]  ;;  %v45_v39 = vld [vmem:[%s441_s0 + $0x68] sm:$0xff] }
   0x8   :  { %v23_v6 = vmax.f32 %v22_v5, 0.0  ;;  %vm249_vm1 = vcmp.eq.s32.totalorder %v141_v16, 1  ;;  %v88_v45 = vld [vmem:[%s442_s3] sm:$0xff]  ;;  %v89_v46 = vld [vmem:[%s442_s3 + $0x8] sm:$0xff]  ;;  %v90_v50 = vld [vmem:[%s442_s3 + $0x10] sm:$0xff] }
   0x9   :  { %v91_v51 = vld [vmem:[%s442_s3 + $0x18] sm:$0xff]  ;;  %v92_v52 = vld [vmem:[%s442_s3 + $0x20] sm:$0xff]  ;;  %v93_v61 = vld [vmem:[%s442_s3 + $0x28] sm:$0xff] }
   0xa   :  { %v27_v7 = vadd.f32 1e-05, %v23_v6  ;;  %v94_v62 = vld [vmem:[%s442_s3 + $0x30] sm:$0xff]  ;;  %v95_v63 = vld [vmem:[%s442_s3 + $0x38] sm:$0xff] }
   0xc   :  { %180 = vrsqrt.f32 %v27_v7 }
  0x19   :  { %v181_v15 = vpop.eup %180 }
  0x1a   :  { %v29_v18 = vmul.f32 %v181_v15, %v24_v13 }
  0x1c   :  { %v30_v24 = vmul.f32 %v29_v18, %v18_v2  ;;  %v238_v25 = vrot.slane %v29_v18, %v50_v14 }
  0x1e   :  { %v31_v33 = vsub.f32 %v25_v17, %v30_v24  ;;  %v52_v34 = vmul.f32 %v238_v25, %v32_v19  ;;  %v53_v35 = vmul.f32 %v238_v25, %v33_v20  ;;  %v54_v36 = vmul.f32 %v238_v25, %v34_v21  ;;  %v96_v24 = vld [vmem:[%s442_s3 + $0x40] sm:$0xff] }
  0x1f   :  { %v55_v40 = vmul.f32 %v238_v25, %v35_v22  ;;  %v56_v41 = vmul.f32 %v238_v25, %v36_v23  ;;  %v57_v42 = vmul.f32 %v238_v25, %v37_v26  ;;  %v58_v43 = vmul.f32 %v238_v25, %v38_v27  ;;  %v46_v26 = vld [vmem:[%s441_s0 + $0x70] sm:$0xff]  ;;  %v47_v27 = vld [vmem:[%s441_s0 + $0x78] sm:$0xff] }
  0x20   :  { %v278_v44 = vrot.slane %v31_v33, %v50_v14  ;;  %v59_v47 = vmul.f32 %v238_v25, %v39_v28  ;;  %v60_v48 = vmul.f32 %v238_v25, %v40_v30  ;;  %v61_v49 = vmul.f32 %v238_v25, %v41_v31  ;;  %v97_v33 = vld [vmem:[%s442_s3 + $0x48] sm:$0xff] }
  0x21   :  { %v62_v53 = vmul.f32 %v238_v25, %v42_v32  ;;  %v63_v54 = vmul.f32 %v238_v25, %v43_v37  ;;  %v64_v55 = vmul.f32 %v238_v25, %v44_v38  ;;  %v65_v56 = vmul.f32 %v238_v25, %v45_v39 }
  0x22   :  { %v72_v57 = vadd.f32 %v278_v44, %v52_v34  ;;  %v73_v58 = vadd.f32 %v278_v44, %v53_v35  ;;  %v74_v59 = vadd.f32 %v278_v44, %v54_v36  ;;  %v75_v60 = vadd.f32 %v278_v44, %v55_v40  ;;  %v98_v34 = vld [vmem:[%s442_s3 + $0x50] sm:$0xff]  ;;  %v99_v35 = vld [vmem:[%s442_s3 + $0x58] sm:$0xff]  ;;  %v100_v40 = vld [vmem:[%s442_s3 + $0x60] sm:$0xff] }
  0x23   :  { %v76_v0 = vadd.f32 %v278_v44, %v56_v41  ;;  %v77_v1 = vadd.f32 %v278_v44, %v57_v42  ;;  %v78_v2 = vadd.f32 %v278_v44, %v58_v43  ;;  %v79_v3 = vadd.f32 %v278_v44, %v59_v47  ;;  %v101_v41 = vld [vmem:[%s442_s3 + $0x68] sm:$0xff] }
  0x24   :  { %v104_v4 = vadd.f32 %v88_v45, %v72_v57  ;;  %v105_v5 = vadd.f32 %v89_v46, %v73_v58  ;;  %v106_v6 = vadd.f32 %v90_v50, %v74_v59  ;;  %v107_v7 = vadd.f32 %v91_v51, %v75_v60  ;;  %v102_v51 = vld [vmem:[%s442_s3 + $0x70] sm:$0xff] }
  0x25   :  { %v108_v8 = vadd.f32 %v92_v52, %v76_v0  ;;  %v109_v9 = vadd.f32 %v93_v61, %v77_v1  ;;  %v110_v10 = vadd.f32 %v94_v62, %v78_v2  ;;  %v111_v11 = vadd.f32 %v95_v63, %v79_v3  ;;  %v103_v52 = vld [vmem:[%s442_s3 + $0x78] sm:$0xff] }
  0x26   :  { %v121_v12 = vmax.f32 %v104_v4, 0.0  ;;  %v122_v13 = vmax.f32 %v105_v5, 0.0  ;;  %v123_v14 = vmax.f32 %v106_v6, 0.0  ;;  %v124_v15 = vmax.f32 %v107_v7, 0.0 }
  0x27   :  { %v125_v16 = vmax.f32 %v108_v8, 0.0  ;;  %v126_v17 = vmax.f32 %v109_v9, 0.0  ;;  %v127_v18 = vmax.f32 %v110_v10, 0.0  ;;  %v128_v19 = vmax.f32 %v111_v11, 0.0 }
  0x28   :  { %v143_v20 = vsel %vm249_vm1, %v121_v12, %v104_v4  ;;  %v144_v21 = vsel %vm249_vm1, %v122_v13, %v105_v5  ;;  %v145_v22 = vsel %vm249_vm1, %v123_v14, %v106_v6  ;;  %v146_v23 = vsel %vm249_vm1, %v124_v15, %v107_v7 }
  0x29   :  { %159 = vst [vmem:[%s443_s4] sm:$0xff] %v143_v20  ;;  %160 = vst [vmem:[%s443_s4 + $0x8] sm:$0xff] %v144_v21  ;;  %v147_v28 = vsel %vm249_vm1, %v125_v16, %v108_v8  ;;  %v148_v30 = vsel %vm249_vm1, %v126_v17, %v109_v9  ;;  %v149_v31 = vsel %vm249_vm1, %v127_v18, %v110_v10 }
  0x2a   :  { %161 = vst [vmem:[%s443_s4 + $0x10] sm:$0xff] %v145_v22  ;;  %162 = vst [vmem:[%s443_s4 + $0x18] sm:$0xff] %v146_v23  ;;  %v150_v32 = vsel %vm249_vm1, %v128_v19, %v111_v11  ;;  %v80_v36 = vadd.f32 %v278_v44, %v60_v48  ;;  %v81_v37 = vadd.f32 %v278_v44, %v61_v49 }
  0x2b   :  { %163 = vst [vmem:[%s443_s4 + $0x20] sm:$0xff] %v147_v28  ;;  %164 = vst [vmem:[%s443_s4 + $0x28] sm:$0xff] %v148_v30  ;;  %v82_v38 = vadd.f32 %v278_v44, %v62_v53  ;;  %v83_v39 = vadd.f32 %v278_v44, %v63_v54  ;;  %v84_v42 = vadd.f32 %v278_v44, %v64_v55 }
  0x2c   :  { %165 = vst [vmem:[%s443_s4 + $0x30] sm:$0xff] %v149_v31  ;;  %166 = vst [vmem:[%s443_s4 + $0x38] sm:$0xff] %v150_v32  ;;  %v85_v43 = vadd.f32 %v278_v44, %v65_v56  ;;  %v66_v45 = vmul.f32 %v238_v25, %v46_v26  ;;  %v67_v46 = vmul.f32 %v238_v25, %v47_v27 }
  0x2d   :  { %v112_v47 = vadd.f32 %v96_v24, %v80_v36  ;;  %v113_v48 = vadd.f32 %v97_v33, %v81_v37  ;;  %v114_v49 = vadd.f32 %v98_v34, %v82_v38  ;;  %v115_v50 = vadd.f32 %v99_v35, %v83_v39 }
  0x2e   :  { %v116_v53 = vadd.f32 %v100_v40, %v84_v42  ;;  %v117_v54 = vadd.f32 %v101_v41, %v85_v43  ;;  %v86_v55 = vadd.f32 %v278_v44, %v66_v45  ;;  %v87_v56 = vadd.f32 %v278_v44, %v67_v46 }
  0x2f   :  { %v129_v57 = vmax.f32 %v112_v47, 0.0  ;;  %v130_v25 = vmax.f32 %v113_v48, 0.0  ;;  %v131_v58 = vmax.f32 %v114_v49, 0.0  ;;  %v132_v59 = vmax.f32 %v115_v50, 0.0 }
  0x30   :  { %v133_v60 = vmax.f32 %v116_v53, 0.0  ;;  %v134_v61 = vmax.f32 %v117_v54, 0.0  ;;  %v118_v62 = vadd.f32 %v102_v51, %v86_v55  ;;  %v119_v63 = vadd.f32 %v103_v52, %v87_v56 }
  0x31   :  { %v151_v0 = vsel %vm249_vm1, %v129_v57, %v112_v47  ;;  %v152_v1 = vsel %vm249_vm1, %v130_v25, %v113_v48  ;;  %v153_v2 = vsel %vm249_vm1, %v131_v58, %v114_v49  ;;  %v154_v44 = vsel %vm249_vm1, %v132_v59, %v115_v50 }
  0x32   :  { %167 = vst [vmem:[%s443_s4 + $0x40] sm:$0xff] %v151_v0  ;;  %168 = vst [vmem:[%s443_s4 + $0x48] sm:$0xff] %v152_v1  ;;  %v155_v3 = vsel %vm249_vm1, %v133_v60, %v116_v53  ;;  %v156_v4 = vsel %vm249_vm1, %v134_v61, %v117_v54  ;;  %v135_v5 = vmax.f32 %v118_v62, 0.0  ;;  %v136_v6 = vmax.f32 %v119_v63, 0.0 }
  0x33   :  { %169 = vst [vmem:[%s443_s4 + $0x50] sm:$0xff] %v153_v2  ;;  %170 = vst [vmem:[%s443_s4 + $0x58] sm:$0xff] %v154_v44 }
  0x34   :  { %171 = vst [vmem:[%s443_s4 + $0x60] sm:$0xff] %v155_v3  ;;  %172 = vst [vmem:[%s443_s4 + $0x68] sm:$0xff] %v156_v4  ;;  %v157_v7 = vsel %vm249_vm1, %v135_v5, %v118_v62  ;;  %v158_v8 = vsel %vm249_vm1, %v136_v6, %v119_v63 }
  0x35   :  { %173 = vst [vmem:[%s443_s4 + $0x70] sm:$0xff] %v157_v7  ;;  %174 = vst [vmem:[%s443_s4 + $0x78] sm:$0xff] %v158_v8 }

</bundles_post_ra>
